<compile_context>
chip_gen: v7x
topology: tpu7x:2x2x1
jax: 0.10.0
libtpu: 0.0.40
codegen_flags: <defaults>
</compile_context>

<pallas_src>
import jax
import jax.numpy as jnp
from jax.experimental import pallas as pl
from jax.experimental.pallas import tpu as pltpu


def _relu6(x):
    return jnp.clip(x, 0.0, 6.0)


def _pick_row_tile(h_out, cap=8):
    """Largest divisor of h_out that is <= cap (output-row tile height).

    In production this would be sized from the VMEM budget (roughly half the
    tile height on v7x's 64 MiB vs v5e/v6e's 128 MiB).  `cap` is kept small
    here so the small test shapes still exercise multi-tile row pipelining
    and the halo handling.
    """
    th = 1
    for t in range(1, min(h_out, cap) + 1):
        if h_out % t == 0:
            th = t
    return th


# ---------------------------------------------------------------------------
# Fused kernel factory (closes over static config).
# ---------------------------------------------------------------------------
def _make_fused_kernel(*, stride, has_expand, use_res, H, Wo, Cin, hidden,
                       Cout, TH):
    s = stride
    rows_main = TH * s            # input rows fully owned by this output tile
    rows_in = rows_main + 2       # + 1 halo row on each side

    def kernel(*refs):
        idx = 0
        if s == 1:
            x_phases = (refs[0],)           # (H, Wo, Cin), Wo == W
            idx = 1
        else:
            x_phases = (refs[0], refs[1])   # even / odd W columns, (H, Wo, Cin)
            idx = 2
        if has_expand:
            w1_ref, s1_ref, b1_ref = refs[idx:idx + 3]
            idx += 3
        wdw_ref, s2_ref, b2_ref, w3_ref, s3_ref, b3_ref = refs[idx:idx + 6]
        out_ref = refs[idx + 6]

        r = pl.program_id(1)
        r0 = r * TH                         # first output row of this tile
        in_start = r0 * s - 1               # global input row of window row 0
        top_idx = jnp.maximum(in_start, 0)
        bot_idx = jnp.minimum(r0 * s + rows_main, H - 1)
        top_ok = (in_start >= 0).astype(jnp.float32)
        bot_ok = (r0 * s + rows_main < H).astype(jnp.float32)

        # --- gather per-phase input row windows (top halo, main, bottom halo)
        pieces = []
        for xp in x_phases:
            pieces.append(xp[pl.ds(top_idx, 1), :, :])
            pieces.append(xp[pl.ds(r0 * s, rows_main), :, :])
            pieces.append(xp[pl.ds(bot_idx, 1), :, :])
        xcat = jnp.concatenate(pieces, axis=0)          # (n_rows, Wo, Cin)
        n_rows = len(x_phases) * rows_in

        # --- 1x1 expand conv (MXU, bf16 operands, f32 accum) + BN + ReLU6
        if has_expand:
            h2 = jnp.dot(xcat.reshape(n_rows * Wo, Cin).astype(jnp.bfloat16),
                         w1_ref[...], preferred_element_type=jnp.float32)
            h2 = _relu6(h2 * s1_ref[...] + b1_ref[...])
            hcat = h2.reshape(n_rows, Wo, hidden)
        else:
            hcat = xcat.astype(jnp.float32)

        # --- rebuild per-phase windows, zeroing out-of-image halo rows.
        # (the conv zero-padding applies to the depthwise *input*, i.e. after
        #  the expand activation, hence masking here and not on x.)
        h_win = []
        off = 0
        for _ in x_phases:
            h_top = hcat[off:off + 1] * top_ok
            h_mid = hcat[off + 1:off + 1 + rows_main]
            h_bot = hcat[off + 1 + rows_main:off + rows_in] * bot_ok
            h_win.append(jnp.concatenate([h_top, h_mid, h_bot], axis=0))
            off += rows_in

        w_taps = wdw_ref[...]                           # (9, hidden), read once
        zcol = jnp.zeros((rows_in, 1, hidden), jnp.float32)
        acc = jnp.zeros((TH, Wo, hidden), jnp.float32)

        if s == 1:
            # zero-pad W by concat; taps are plain offset slices.
            hp = jnp.concatenate([zcol, h_win[0], zcol], axis=1)  # (rows, Wo+2, hid)
            for di in range(3):
                rows_sl = hp[di:di + TH]
                for dj in range(3):
                    k = di * 3 + dj
                    acc = acc + rows_sl[:, dj:dj + Wo, :] * w_taps[k:k + 1, :]
        else:
            # stride-2: column phases (even/odd W) + row phases of the window,
            # so only the strided output positions are ever multiplied.
            he, ho = h_win                              # even / odd columns
            hom = jnp.concatenate([zcol, ho[:, 0:Wo - 1, :]], axis=1)
            he2 = he.reshape(TH + 1, 2, Wo, hidden)     # window row p = 2a + b
            ho2 = ho.reshape(TH + 1, 2, Wo, hidden)
            hom2 = hom.reshape(TH + 1, 2, Wo, hidden)
            col_phase = (hom2, he2, ho2)                # dj = 0, 1, 2
            for di in range(3):
                for dj in range(3):
                    ph = col_phase[dj]
                    if di == 0:
                        t = ph[0:TH, 0]
                    elif di == 1:
                        t = ph[0:TH, 1]
                    else:
                        t = ph[1:TH + 1, 0]
                    k = di * 3 + dj
                    acc = acc + t * w_taps[k:k + 1, :]

        y = _relu6(acc * s2_ref[...] + b2_ref[...])     # (TH, Wo, hidden) f32

        # --- 1x1 projection conv (MXU) + BN (+ residual)
        z = jnp.dot(y.reshape(TH * Wo, hidden).astype(jnp.bfloat16),
                    w3_ref[...], preferred_element_type=jnp.float32)
        z = (z * s3_ref[...] + b3_ref[...]).reshape(TH, Wo, Cout)
        if use_res:
            z = z + x_phases[0][pl.ds(r0, TH), :, :]
        out_ref[...] = z

    return kernel


# ---------------------------------------------------------------------------
# Wrapper (NCHW in / NCHW out, like the PyTorch module).
# ---------------------------------------------------------------------------
def inverted_residual_forward(x_nchw, params, *, stride, expand_ratio):
    assert stride in (1, 2)
    N, Cin, H, W = x_nchw.shape
    hidden = int(Cin * expand_ratio)
    Cout = params["w3"].shape[1]
    use_res = (stride == 1) and (Cin == Cout)
    has_expand = expand_ratio != 1

    x = jnp.transpose(x_nchw, (0, 2, 3, 1)).astype(jnp.float32)   # NHWC

    if stride == 2:
        assert H % 2 == 0 and W % 2 == 0, "stride-2 path assumes even H, W"
        Ho, Wo = H // 2, W // 2
        # W-polyphase split of the *input* (cheap XLA glue on the smallest
        # tensor); H decimation is handled in-kernel via row indexing.
        x_in = (x[:, :, 0::2, :], x[:, :, 1::2, :])
    else:
        Ho, Wo = H, W
        x_in = (x,)

    TH = _pick_row_tile(Ho)
    n_rt = Ho // TH

    const = lambda n, r: (0, 0)
    in_specs = []
    args = []
    for xp in x_in:
        in_specs.append(pl.BlockSpec((None, H, Wo, Cin),
                                     lambda n, r: (n, 0, 0, 0)))
        args.append(xp)
    if has_expand:
        in_specs += [pl.BlockSpec((Cin, hidden), const),
                     pl.BlockSpec((1, hidden), const),
                     pl.BlockSpec((1, hidden), const)]
        args += [params["w1"].astype(jnp.bfloat16), params["s1"], params["b1"]]
    in_specs += [pl.BlockSpec((9, hidden), const),
                 pl.BlockSpec((1, hidden), const),
                 pl.BlockSpec((1, hidden), const),
                 pl.BlockSpec((hidden, Cout), const),
                 pl.BlockSpec((1, Cout), const),
                 pl.BlockSpec((1, Cout), const)]
    args += [params["wdw"], params["s2"], params["b2"],
             params["w3"].astype(jnp.bfloat16), params["s3"], params["b3"]]

    kernel = _make_fused_kernel(stride=stride, has_expand=has_expand,
                                use_res=use_res, H=H, Wo=Wo, Cin=Cin,
                                hidden=hidden, Cout=Cout, TH=TH)

    out = pl.pallas_call(
        kernel,
        out_shape=jax.ShapeDtypeStruct((N, Ho, Wo, Cout), jnp.float32),
        grid=(N, n_rt),
        in_specs=in_specs,
        out_specs=pl.BlockSpec((None, TH, Wo, Cout), lambda n, r: (n, r, 0, 0)),
        compiler_params=pltpu.CompilerParams(
            dimension_semantics=("parallel", "arbitrary"),
            vmem_limit_bytes=64 * 1024 * 1024),
    )(*args)

    return jnp.transpose(out, (0, 3, 1, 2))                       # back to NCHW


# ---------------------------------------------------------------------------
# Deterministic synthetic parameters (shapes implied by __init__).
# ---------------------------------------------------------------------------
def init_params(key, inp, oup, expand_ratio):
    hidden = int(inp * expand_ratio)
    eps = 1e-5
    ks = jax.random.split(key, 16)

    def bn_fold(kg, kb, km, kv, c):
        gamma = 1.0 + 0.1 * jax.random.normal(kg, (c,), jnp.float32)
        beta = 0.1 * jax.random.normal(kb, (c,), jnp.float32)
        mean = 0.1 * jax.random.normal(km, (c,), jnp.float32)
        var = jax.nn.softplus(jax.random.normal(kv, (c,), jnp.float32)) + 0.5
        scale = gamma / jnp.sqrt(var + eps)
        bias = beta - mean * scale
        return scale.reshape(1, c), bias.reshape(1, c)

    p = {}
    if expand_ratio != 1:
        # Conv2d(inp, hidden, 1) weight [hidden, inp, 1, 1] -> stored [inp, hidden]
        p["w1"] = 0.3 * jax.random.normal(ks[0], (inp, hidden), jnp.float32)
        p["s1"], p["b1"] = bn_fold(ks[1], ks[2], ks[3], ks[4], hidden)
    # Conv2d(hidden, hidden, 3, groups=hidden) weight [hidden, 1, 3, 3]
    #   -> stored [9, hidden] with wdw[di*3+dj, c] = weight[c, 0, di, dj]
    p["wdw"] = 0.3 * jax.random.normal(ks[5], (9, hidden), jnp.float32)
    p["s2"], p["b2"] = bn_fold(ks[6], ks[7], ks[8], ks[9], hidden)
    # Conv2d(hidden, oup, 1) weight [oup, hidden, 1, 1] -> stored [hidden, oup]
    p["w3"] = 0.3 * jax.random.normal(ks[10], (hidden, oup), jnp.float32)
    p["s3"], p["b3"] = bn_fold(ks[11], ks[12], ks[13], ks[14], oup)
    return p


# ---------------------------------------------------------------------------
# Pure-JAX reference (mirrors the kernel's precision policy: bf16 MXU
# operands, f32 accumulation / elementwise).
# ---------------------------------------------------------------------------
def reference_forward(x_nchw, p, *, stride, expand_ratio):
    N, Cin, H, W = x_nchw.shape
    hidden = int(Cin * expand_ratio)
    oup = p["w3"].shape[1]
    s = stride
    x = jnp.transpose(x_nchw, (0, 2, 3, 1)).astype(jnp.float32)
    if expand_ratio != 1:
        h = jnp.einsum("nhwc,cd->nhwd", x.astype(jnp.bfloat16),
                       p["w1"].astype(jnp.bfloat16),
                       preferred_element_type=jnp.float32)
        h = _relu6(h * p["s1"][0] + p["b1"][0])
    else:
        h = x
    Ho = (H - 1) // s + 1
    Wo = (W - 1) // s + 1
    hp = jnp.pad(h, ((0, 0), (1, 1), (1, 1), (0, 0)))
    acc = jnp.zeros((N, Ho, Wo, hidden), jnp.float32)
    for di in range(3):
        for dj in range(3):
            win = hp[:, di:di + (Ho - 1) * s + 1:s,
                     dj:dj + (Wo - 1) * s + 1:s, :]
            acc = acc + win * p["wdw"][di * 3 + dj]
    y = _relu6(acc * p["s2"][0] + p["b2"][0])
    z = jnp.einsum("nhwc,cd->nhwd", y.astype(jnp.bfloat16),
                   p["w3"].astype(jnp.bfloat16),
                   preferred_element_type=jnp.float32)
    z = z * p["s3"][0] + p["b3"][0]
    if s == 1 and Cin == oup:
        z = z + x
    return jnp.transpose(z, (0, 3, 1, 2))


if __name__ == "__main__":
    key = jax.random.PRNGKey(0)
    k_x, k_x2, k_x3, k_p1, k_p2, k_p3 = jax.random.split(key, 6)
    # Tolerance accounts for bf16 MXU operands (f32 accumulation).
    TOL = dict(atol=2e-2, rtol=2e-2)

    # Config A: stride=1, expand_ratio=4, inp == oup -> residual path,
    #           two output-row tiles (exercises halo handling + pipelining).
    inp, oup = 8, 8
    x = jax.random.normal(k_x, (2, inp, 16, 16), jnp.float32)      # NCHW
    params = init_params(k_p1, inp, oup, 4)
    out = jax.block_until_ready(
        inverted_residual_forward(x, params, stride=1, expand_ratio=4))
    ref = reference_forward(x, params, stride=1, expand_ratio=4)
    assert out.shape == (2, oup, 16, 16)
    assert jnp.allclose(out, ref, **TOL), float(jnp.max(jnp.abs(out - ref)))

    # Config B: stride=2, expand_ratio=1 -> no expand conv, no residual.
    inp2, oup2 = 8, 16
    x2 = jax.random.normal(k_x2, (2, inp2, 16, 16), jnp.float32)
    params2 = init_params(k_p2, inp2, oup2, 1)
    out2 = jax.block_until_ready(
        inverted_residual_forward(x2, params2, stride=2, expand_ratio=1))
    ref2 = reference_forward(x2, params2, stride=2, expand_ratio=1)
    assert out2.shape == (2, oup2, 8, 8)
    assert jnp.allclose(out2, ref2, **TOL), float(jnp.max(jnp.abs(out2 - ref2)))

    # Config C: stride=2, expand_ratio=4 -> expand + downsample (typical
    #           MobileNetV2 downsampling block).
    inp3, oup3 = 8, 16
    x3 = jax.random.normal(k_x3, (2, inp3, 16, 16), jnp.float32)
    params3 = init_params(k_p3, inp3, oup3, 4)
    out3 = jax.block_until_ready(
        inverted_residual_forward(x3, params3, stride=2, expand_ratio=4))
    ref3 = reference_forward(x3, params3, stride=2, expand_ratio=4)
    assert out3.shape == (2, oup3, 8, 8)
    assert jnp.allclose(out3, ref3, **TOL), float(jnp.max(jnp.abs(out3 - ref3)))

    print("KERNEL_OK")
</pallas_src>

<mosaic_0001>
module attributes {stable_mosaic.version = 11 : i64} {
  func.func @kernel(%arg0: i32, %arg1: i32, %arg2: memref<1x16x16x8xf32, #tpu.memory_space<vmem>>, %arg3: memref<8x32xbf16, #tpu.memory_space<vmem>>, %arg4: memref<1x32xf32, #tpu.memory_space<vmem>>, %arg5: memref<1x32xf32, #tpu.memory_space<vmem>>, %arg6: memref<9x32xf32, #tpu.memory_space<vmem>>, %arg7: memref<1x32xf32, #tpu.memory_space<vmem>>, %arg8: memref<1x32xf32, #tpu.memory_space<vmem>>, %arg9: memref<32x8xbf16, #tpu.memory_space<vmem>>, %arg10: memref<1x8xf32, #tpu.memory_space<vmem>>, %arg11: memref<1x8xf32, #tpu.memory_space<vmem>>, %arg12: memref<1x8x16x8xf32, #tpu.memory_space<vmem>>) attributes {dimension_semantics = [#tpu.dimension_semantics<parallel>, #tpu.dimension_semantics<arbitrary>], iteration_bounds = array<i64: 2, 2>, scalar_prefetch = 0 : i64, scratch_operands = 0 : i64, tpu.core_type = #tpu.core_type<tc>, window_params = [{transform_indices = @transform_0, window_bounds = array<i64: 1, 16, 16, 8>}, {pipeline_mode = #tpu.pipeline_mode<synchronous>, transform_indices = @transform_1, window_bounds = array<i64: 8, 32>}, {pipeline_mode = #tpu.pipeline_mode<synchronous>, transform_indices = @transform_2, window_bounds = array<i64: 1, 32>}, {pipeline_mode = #tpu.pipeline_mode<synchronous>, transform_indices = @transform_3, window_bounds = array<i64: 1, 32>}, {pipeline_mode = #tpu.pipeline_mode<synchronous>, transform_indices = @transform_4, window_bounds = array<i64: 9, 32>}, {pipeline_mode = #tpu.pipeline_mode<synchronous>, transform_indices = @transform_5, window_bounds = array<i64: 1, 32>}, {pipeline_mode = #tpu.pipeline_mode<synchronous>, transform_indices = @transform_6, window_bounds = array<i64: 1, 32>}, {pipeline_mode = #tpu.pipeline_mode<synchronous>, transform_indices = @transform_7, window_bounds = array<i64: 32, 8>}, {pipeline_mode = #tpu.pipeline_mode<synchronous>, transform_indices = @transform_8, window_bounds = array<i64: 1, 8>}, {pipeline_mode = #tpu.pipeline_mode<synchronous>, transform_indices = @transform_9, window_bounds = array<i64: 1, 8>}, {transform_indices = @transform_10, window_bounds = array<i64: 1, 8, 16, 8>}]} {
    %c8_i32 = arith.constant 8 : i32
    %0 = arith.muli %arg1, %c8_i32 : i32
    %c1_i32 = arith.constant 1 : i32
    %1 = arith.muli %0, %c1_i32 : i32
    %c1_i32_0 = arith.constant 1 : i32
    %2 = arith.subi %1, %c1_i32_0 : i32
    %c0_i32 = arith.constant 0 : i32
    %3 = arith.maxsi %2, %c0_i32 : i32
    %c1_i32_1 = arith.constant 1 : i32
    %4 = arith.muli %0, %c1_i32_1 : i32
    %c8_i32_2 = arith.constant 8 : i32
    %5 = arith.addi %4, %c8_i32_2 : i32
    %c15_i32 = arith.constant 15 : i32
    %6 = arith.minsi %5, %c15_i32 : i32
    %c0_i32_3 = arith.constant 0 : i32
    %7 = arith.cmpi sge, %2, %c0_i32_3 : i32
    %8 = arith.extui %7 : i1 to i32
    %9 = arith.sitofp %8 : i32 to f32
    %c1_i32_4 = arith.constant 1 : i32
    %10 = arith.muli %0, %c1_i32_4 : i32
    %c8_i32_5 = arith.constant 8 : i32
    %11 = arith.addi %10, %c8_i32_5 : i32
    %c16_i32 = arith.constant 16 : i32
    %12 = arith.cmpi slt, %11, %c16_i32 : i32
    %13 = arith.extui %12 : i1 to i32
    %14 = arith.sitofp %13 : i32 to f32
    %c0 = arith.constant 0 : index
    %15 = arith.index_cast %3 : i32 to index
    %c0_6 = arith.constant 0 : index
    %c0_7 = arith.constant 0 : index
    %16 = vector.load %arg2[%c0, %15, %c0_6, %c0_7] : memref<1x16x16x8xf32, #tpu.memory_space<vmem>>, vector<1x1x16x8xf32>
    %17 = vector.shape_cast %16 : vector<1x1x16x8xf32> to vector<1x16x8xf32>
    %c1_i32_8 = arith.constant 1 : i32
    %18 = arith.muli %0, %c1_i32_8 : i32
    %c0_9 = arith.constant 0 : index
    %19 = arith.index_cast %18 : i32 to index
    %c0_10 = arith.constant 0 : index
    %c0_11 = arith.constant 0 : index
    %20 = vector.load %arg2[%c0_9, %19, %c0_10, %c0_11] : memref<1x16x16x8xf32, #tpu.memory_space<vmem>>, vector<1x8x16x8xf32>
    %21 = vector.shape_cast %20 : vector<1x8x16x8xf32> to vector<8x16x8xf32>
    %c0_12 = arith.constant 0 : index
    %22 = arith.index_cast %6 : i32 to index
    %c0_13 = arith.constant 0 : index
    %c0_14 = arith.constant 0 : index
    %23 = vector.load %arg2[%c0_12, %22, %c0_13, %c0_14] : memref<1x16x16x8xf32, #tpu.memory_space<vmem>>, vector<1x1x16x8xf32>
    %24 = vector.shape_cast %23 : vector<1x1x16x8xf32> to vector<1x16x8xf32>
    %25 = tpu.concatenate %17, %21, %24 in 0 : vector<1x16x8xf32>, vector<8x16x8xf32>, vector<1x16x8xf32> -> vector<10x16x8xf32>
    %26 = vector.shape_cast %25 : vector<10x16x8xf32> to vector<160x8xf32>
    %27 = arith.truncf %26 : vector<160x8xf32> to vector<160x8xbf16>
    %c0_15 = arith.constant 0 : index
    %c0_16 = arith.constant 0 : index
    %28 = vector.load %arg3[%c0_15, %c0_16] : memref<8x32xbf16, #tpu.memory_space<vmem>>, vector<8x32xbf16>
    %cst = arith.constant dense<0.000000e+00> : vector<160x32xf32>
    %29 = tpu.matmul %27, %28, %cst {dimension_numbers = #tpu.dot_dimension_numbers<[1], [0], [0], [1], [0, 0, 1, 1], [], []>} : vector<160x8xbf16>, vector<8x32xbf16>, vector<160x32xf32> -> vector<160x32xf32>
    %c0_17 = arith.constant 0 : index
    %c0_18 = arith.constant 0 : index
    %30 = vector.load %arg4[%c0_17, %c0_18] : memref<1x32xf32, #tpu.memory_space<vmem>>, vector<1x32xf32>
    %31 = vector.broadcast %30 : vector<1x32xf32> to vector<160x32xf32>
    %32 = arith.mulf %29, %31 : vector<160x32xf32>
    %c0_19 = arith.constant 0 : index
    %c0_20 = arith.constant 0 : index
    %33 = vector.load %arg5[%c0_19, %c0_20] : memref<1x32xf32, #tpu.memory_space<vmem>>, vector<1x32xf32>
    %34 = vector.broadcast %33 : vector<1x32xf32> to vector<160x32xf32>
    %35 = arith.addf %32, %34 : vector<160x32xf32>
    %cst_21 = arith.constant 0.000000e+00 : f32
    %cst_22 = arith.constant 6.000000e+00 : f32
    %36 = vector.broadcast %cst_21 : f32 to vector<160x32xf32>
    %37 = arith.maximumf %36, %35 : vector<160x32xf32>
    %38 = vector.broadcast %cst_22 : f32 to vector<160x32xf32>
    %39 = arith.minimumf %38, %37 : vector<160x32xf32>
    %40 = vector.shape_cast %39 : vector<160x32xf32> to vector<10x16x32xf32>
    %41 = vector.extract_strided_slice %40 {offsets = [0, 0, 0], sizes = [1, 16, 32], strides = [1, 1, 1]} : vector<10x16x32xf32> to vector<1x16x32xf32>
    %42 = vector.broadcast %9 : f32 to vector<1x16x32xf32>
    %43 = arith.mulf %41, %42 : vector<1x16x32xf32>
    %44 = vector.extract_strided_slice %40 {offsets = [1, 0, 0], sizes = [8, 16, 32], strides = [1, 1, 1]} : vector<10x16x32xf32> to vector<8x16x32xf32>
    %45 = vector.extract_strided_slice %40 {offsets = [9, 0, 0], sizes = [1, 16, 32], strides = [1, 1, 1]} : vector<10x16x32xf32> to vector<1x16x32xf32>
    %46 = vector.broadcast %14 : f32 to vector<1x16x32xf32>
    %47 = arith.mulf %45, %46 : vector<1x16x32xf32>
    %48 = tpu.concatenate %43, %44, %47 in 0 : vector<1x16x32xf32>, vector<8x16x32xf32>, vector<1x16x32xf32> -> vector<10x16x32xf32>
    %c0_23 = arith.constant 0 : index
    %c0_24 = arith.constant 0 : index
    %49 = vector.load %arg6[%c0_23, %c0_24] : memref<9x32xf32, #tpu.memory_space<vmem>>, vector<9x32xf32>
    %cst_25 = arith.constant 0.000000e+00 : f32
    %50 = vector.broadcast %cst_25 : f32 to vector<10x1x32xf32>
    %cst_26 = arith.constant 0.000000e+00 : f32
    %51 = vector.broadcast %cst_26 : f32 to vector<8x16x32xf32>
    %52 = tpu.concatenate %50, %48, %50 in 1 : vector<10x1x32xf32>, vector<10x16x32xf32>, vector<10x1x32xf32> -> vector<10x18x32xf32>
    %53 = vector.extract_strided_slice %52 {offsets = [0, 0, 0], sizes = [8, 18, 32], strides = [1, 1, 1]} : vector<10x18x32xf32> to vector<8x18x32xf32>
    %54 = vector.extract_strided_slice %53 {offsets = [0, 0, 0], sizes = [8, 16, 32], strides = [1, 1, 1]} : vector<8x18x32xf32> to vector<8x16x32xf32>
    %55 = vector.extract_strided_slice %49 {offsets = [0, 0], sizes = [1, 32], strides = [1, 1]} : vector<9x32xf32> to vector<1x32xf32>
    %56 = vector.shape_cast %55 : vector<1x32xf32> to vector<1x1x32xf32>
    %57 = vector.broadcast %56 : vector<1x1x32xf32> to vector<8x16x32xf32>
    %58 = arith.mulf %54, %57 : vector<8x16x32xf32>
    %59 = arith.addf %51, %58 : vector<8x16x32xf32>
    %60 = vector.extract_strided_slice %53 {offsets = [0, 1, 0], sizes = [8, 16, 32], strides = [1, 1, 1]} : vector<8x18x32xf32> to vector<8x16x32xf32>
    %61 = vector.extract_strided_slice %49 {offsets = [1, 0], sizes = [1, 32], strides = [1, 1]} : vector<9x32xf32> to vector<1x32xf32>
    %62 = vector.shape_cast %61 : vector<1x32xf32> to vector<1x1x32xf32>
    %63 = vector.broadcast %62 : vector<1x1x32xf32> to vector<8x16x32xf32>
    %64 = arith.mulf %60, %63 : vector<8x16x32xf32>
    %65 = arith.addf %59, %64 : vector<8x16x32xf32>
    %66 = vector.extract_strided_slice %53 {offsets = [0, 2, 0], sizes = [8, 16, 32], strides = [1, 1, 1]} : vector<8x18x32xf32> to vector<8x16x32xf32>
    %67 = vector.extract_strided_slice %49 {offsets = [2, 0], sizes = [1, 32], strides = [1, 1]} : vector<9x32xf32> to vector<1x32xf32>
    %68 = vector.shape_cast %67 : vector<1x32xf32> to vector<1x1x32xf32>
    %69 = vector.broadcast %68 : vector<1x1x32xf32> to vector<8x16x32xf32>
    %70 = arith.mulf %66, %69 : vector<8x16x32xf32>
    %71 = arith.addf %65, %70 : vector<8x16x32xf32>
    %72 = vector.extract_strided_slice %52 {offsets = [1, 0, 0], sizes = [8, 18, 32], strides = [1, 1, 1]} : vector<10x18x32xf32> to vector<8x18x32xf32>
    %73 = vector.extract_strided_slice %72 {offsets = [0, 0, 0], sizes = [8, 16, 32], strides = [1, 1, 1]} : vector<8x18x32xf32> to vector<8x16x32xf32>
    %74 = vector.extract_strided_slice %49 {offsets = [3, 0], sizes = [1, 32], strides = [1, 1]} : vector<9x32xf32> to vector<1x32xf32>
    %75 = vector.shape_cast %74 : vector<1x32xf32> to vector<1x1x32xf32>
    %76 = vector.broadcast %75 : vector<1x1x32xf32> to vector<8x16x32xf32>
    %77 = arith.mulf %73, %76 : vector<8x16x32xf32>
    %78 = arith.addf %71, %77 : vector<8x16x32xf32>
    %79 = vector.extract_strided_slice %72 {offsets = [0, 1, 0], sizes = [8, 16, 32], strides = [1, 1, 1]} : vector<8x18x32xf32> to vector<8x16x32xf32>
    %80 = vector.extract_strided_slice %49 {offsets = [4, 0], sizes = [1, 32], strides = [1, 1]} : vector<9x32xf32> to vector<1x32xf32>
    %81 = vector.shape_cast %80 : vector<1x32xf32> to vector<1x1x32xf32>
    %82 = vector.broadcast %81 : vector<1x1x32xf32> to vector<8x16x32xf32>
    %83 = arith.mulf %79, %82 : vector<8x16x32xf32>
    %84 = arith.addf %78, %83 : vector<8x16x32xf32>
    %85 = vector.extract_strided_slice %72 {offsets = [0, 2, 0], sizes = [8, 16, 32], strides = [1, 1, 1]} : vector<8x18x32xf32> to vector<8x16x32xf32>
    %86 = vector.extract_strided_slice %49 {offsets = [5, 0], sizes = [1, 32], strides = [1, 1]} : vector<9x32xf32> to vector<1x32xf32>
    %87 = vector.shape_cast %86 : vector<1x32xf32> to vector<1x1x32xf32>
    %88 = vector.broadcast %87 : vector<1x1x32xf32> to vector<8x16x32xf32>
    %89 = arith.mulf %85, %88 : vector<8x16x32xf32>
    %90 = arith.addf %84, %89 : vector<8x16x32xf32>
    %91 = vector.extract_strided_slice %52 {offsets = [2, 0, 0], sizes = [8, 18, 32], strides = [1, 1, 1]} : vector<10x18x32xf32> to vector<8x18x32xf32>
    %92 = vector.extract_strided_slice %91 {offsets = [0, 0, 0], sizes = [8, 16, 32], strides = [1, 1, 1]} : vector<8x18x32xf32> to vector<8x16x32xf32>
    %93 = vector.extract_strided_slice %49 {offsets = [6, 0], sizes = [1, 32], strides = [1, 1]} : vector<9x32xf32> to vector<1x32xf32>
    %94 = vector.shape_cast %93 : vector<1x32xf32> to vector<1x1x32xf32>
    %95 = vector.broadcast %94 : vector<1x1x32xf32> to vector<8x16x32xf32>
    %96 = arith.mulf %92, %95 : vector<8x16x32xf32>
    %97 = arith.addf %90, %96 : vector<8x16x32xf32>
    %98 = vector.extract_strided_slice %91 {offsets = [0, 1, 0], sizes = [8, 16, 32], strides = [1, 1, 1]} : vector<8x18x32xf32> to vector<8x16x32xf32>
    %99 = vector.extract_strided_slice %49 {offsets = [7, 0], sizes = [1, 32], strides = [1, 1]} : vector<9x32xf32> to vector<1x32xf32>
    %100 = vector.shape_cast %99 : vector<1x32xf32> to vector<1x1x32xf32>
    %101 = vector.broadcast %100 : vector<1x1x32xf32> to vector<8x16x32xf32>
    %102 = arith.mulf %98, %101 : vector<8x16x32xf32>
    %103 = arith.addf %97, %102 : vector<8x16x32xf32>
    %104 = vector.extract_strided_slice %91 {offsets = [0, 2, 0], sizes = [8, 16, 32], strides = [1, 1, 1]} : vector<8x18x32xf32> to vector<8x16x32xf32>
    %105 = vector.extract_strided_slice %49 {offsets = [8, 0], sizes = [1, 32], strides = [1, 1]} : vector<9x32xf32> to vector<1x32xf32>
    %106 = vector.shape_cast %105 : vector<1x32xf32> to vector<1x1x32xf32>
    %107 = vector.broadcast %106 : vector<1x1x32xf32> to vector<8x16x32xf32>
    %108 = arith.mulf %104, %107 : vector<8x16x32xf32>
    %109 = arith.addf %103, %108 : vector<8x16x32xf32>
    %c0_27 = arith.constant 0 : index
    %c0_28 = arith.constant 0 : index
    %110 = vector.load %arg7[%c0_27, %c0_28] : memref<1x32xf32, #tpu.memory_space<vmem>>, vector<1x32xf32>
    %111 = vector.shape_cast %110 : vector<1x32xf32> to vector<1x1x32xf32>
    %112 = vector.broadcast %111 : vector<1x1x32xf32> to vector<8x16x32xf32>
    %113 = arith.mulf %109, %112 : vector<8x16x32xf32>
    %c0_29 = arith.constant 0 : index
    %c0_30 = arith.constant 0 : index
    %114 = vector.load %arg8[%c0_29, %c0_30] : memref<1x32xf32, #tpu.memory_space<vmem>>, vector<1x32xf32>
    %115 = vector.shape_cast %114 : vector<1x32xf32> to vector<1x1x32xf32>
    %116 = vector.broadcast %115 : vector<1x1x32xf32> to vector<8x16x32xf32>
    %117 = arith.addf %113, %116 : vector<8x16x32xf32>
    %cst_31 = arith.constant 0.000000e+00 : f32
    %cst_32 = arith.constant 6.000000e+00 : f32
    %118 = vector.broadcast %cst_31 : f32 to vector<8x16x32xf32>
    %119 = arith.maximumf %118, %117 : vector<8x16x32xf32>
    %120 = vector.broadcast %cst_32 : f32 to vector<8x16x32xf32>
    %121 = arith.minimumf %120, %119 : vector<8x16x32xf32>
    %122 = vector.shape_cast %121 : vector<8x16x32xf32> to vector<128x32xf32>
    %123 = arith.truncf %122 : vector<128x32xf32> to vector<128x32xbf16>
    %c0_33 = arith.constant 0 : index
    %c0_34 = arith.constant 0 : index
    %124 = vector.load %arg9[%c0_33, %c0_34] : memref<32x8xbf16, #tpu.memory_space<vmem>>, vector<32x8xbf16>
    %cst_35 = arith.constant dense<0.000000e+00> : vector<128x8xf32>
    %125 = tpu.matmul %123, %124, %cst_35 {dimension_numbers = #tpu.dot_dimension_numbers<[1], [0], [0], [1], [0, 0, 1, 1], [], []>} : vector<128x32xbf16>, vector<32x8xbf16>, vector<128x8xf32> -> vector<128x8xf32>
    %c0_36 = arith.constant 0 : index
    %c0_37 = arith.constant 0 : index
    %126 = vector.load %arg10[%c0_36, %c0_37] : memref<1x8xf32, #tpu.memory_space<vmem>>, vector<1x8xf32>
    %127 = vector.broadcast %126 : vector<1x8xf32> to vector<128x8xf32>
    %128 = arith.mulf %125, %127 : vector<128x8xf32>
    %c0_38 = arith.constant 0 : index
    %c0_39 = arith.constant 0 : index
    %129 = vector.load %arg11[%c0_38, %c0_39] : memref<1x8xf32, #tpu.memory_space<vmem>>, vector<1x8xf32>
    %130 = vector.broadcast %129 : vector<1x8xf32> to vector<128x8xf32>
    %131 = arith.addf %128, %130 : vector<128x8xf32>
    %132 = vector.shape_cast %131 : vector<128x8xf32> to vector<8x16x8xf32>
    %c0_40 = arith.constant 0 : index
    %133 = arith.index_cast %0 : i32 to index
    %c0_41 = arith.constant 0 : index
    %c0_42 = arith.constant 0 : index
    %134 = vector.load %arg2[%c0_40, %133, %c0_41, %c0_42] : memref<1x16x16x8xf32, #tpu.memory_space<vmem>>, vector<1x8x16x8xf32>
    %135 = vector.shape_cast %134 : vector<1x8x16x8xf32> to vector<8x16x8xf32>
    %136 = arith.addf %132, %135 : vector<8x16x8xf32>
    %c0_43 = arith.constant 0 : index
    %c0_44 = arith.constant 0 : index
    %c0_45 = arith.constant 0 : index
    %c0_46 = arith.constant 0 : index
    %137 = vector.load %arg12[%c0_43, %c0_44, %c0_45, %c0_46] : memref<1x8x16x8xf32, #tpu.memory_space<vmem>>, vector<1x8x16x8xf32>
    %138 = vector.shape_cast %137 : vector<1x8x16x8xf32> to vector<8x16x8xf32>
    %139 = vector.shape_cast %136 : vector<8x16x8xf32> to vector<1x8x16x8xf32>
    tpu.vector_store %arg12[%c0_43, %c0_44, %c0_45, %c0_46], %139 {strides = array<i32>} : memref<1x8x16x8xf32, #tpu.memory_space<vmem>>, vector<1x8x16x8xf32>,
    return
  }
  func.func @transform_0(%arg0: i32, %arg1: i32) -> (i32, i32, i32, i32) {
    %c0_i32 = arith.constant 0 : i32
    %c0_i32_0 = arith.constant 0 : i32
    %c0_i32_1 = arith.constant 0 : i32
    %c0_i32_2 = arith.constant 0 : i32
    return %arg0, %c0_i32, %c0_i32_0, %c0_i32_1 : i32, i32, i32, i32
  }
  func.func @transform_1(%arg0: i32, %arg1: i32) -> (i32, i32) {
    %c0_i32 = arith.constant 0 : i32
    %c0_i32_0 = arith.constant 0 : i32
    %c0_i32_1 = arith.constant 0 : i32
    return %c0_i32, %c0_i32_0 : i32, i32
  }
  func.func @transform_2(%arg0: i32, %arg1: i32) -> (i32, i32) {
    %c0_i32 = arith.constant 0 : i32
    %c0_i32_0 = arith.constant 0 : i32
    %c0_i32_1 = arith.constant 0 : i32
    return %c0_i32, %c0_i32_0 : i32, i32
  }
  func.func @transform_3(%arg0: i32, %arg1: i32) -> (i32, i32) {
    %c0_i32 = arith.constant 0 : i32
    %c0_i32_0 = arith.constant 0 : i32
    %c0_i32_1 = arith.constant 0 : i32
    return %c0_i32, %c0_i32_0 : i32, i32
  }
  func.func @transform_4(%arg0: i32, %arg1: i32) -> (i32, i32) {
    %c0_i32 = arith.constant 0 : i32
    %c0_i32_0 = arith.constant 0 : i32
    %c0_i32_1 = arith.constant 0 : i32
    return %c0_i32, %c0_i32_0 : i32, i32
  }
  func.func @transform_5(%arg0: i32, %arg1: i32) -> (i32, i32) {
    %c0_i32 = arith.constant 0 : i32
    %c0_i32_0 = arith.constant 0 : i32
    %c0_i32_1 = arith.constant 0 : i32
    return %c0_i32, %c0_i32_0 : i32, i32
  }
  func.func @transform_6(%arg0: i32, %arg1: i32) -> (i32, i32) {
    %c0_i32 = arith.constant 0 : i32
    %c0_i32_0 = arith.constant 0 : i32
    %c0_i32_1 = arith.constant 0 : i32
    return %c0_i32, %c0_i32_0 : i32, i32
  }
  func.func @transform_7(%arg0: i32, %arg1: i32) -> (i32, i32) {
    %c0_i32 = arith.constant 0 : i32
    %c0_i32_0 = arith.constant 0 : i32
    %c0_i32_1 = arith.constant 0 : i32
    return %c0_i32, %c0_i32_0 : i32, i32
  }
  func.func @transform_8(%arg0: i32, %arg1: i32) -> (i32, i32) {
    %c0_i32 = arith.constant 0 : i32
    %c0_i32_0 = arith.constant 0 : i32
    %c0_i32_1 = arith.constant 0 : i32
    return %c0_i32, %c0_i32_0 : i32, i32
  }
  func.func @transform_9(%arg0: i32, %arg1: i32) -> (i32, i32) {
    %c0_i32 = arith.constant 0 : i32
    %c0_i32_0 = arith.constant 0 : i32
    %c0_i32_1 = arith.constant 0 : i32
    return %c0_i32, %c0_i32_0 : i32, i32
  }
  func.func @transform_10(%arg0: i32, %arg1: i32) -> (i32, i32, i32, i32) {
    %c0_i32 = arith.constant 0 : i32
    %c0_i32_0 = arith.constant 0 : i32
    %c0_i32_1 = arith.constant 0 : i32
    return %arg0, %arg1, %c0_i32, %c0_i32_0 : i32, i32, i32, i32
  }
}

</mosaic_0001>

<bundles_post_ra>
// kernel: tpu_custom_call.1
= control target key start
LH: loop header
LB: loop body
LE: loop exit
PB: predicated region body
PF: predicated region fallthrough
CT: control target
= control target key end

     0   :  { %s4912_s0 = inlined_call_operand.hbm [shape: f32[2,16,16,8], index: 0, kind: input, shape index: {}]   ;;  %s4913_s1 = inlined_call_operand.hbm [shape: bf16[8,32], index: 1, kind: input, shape index: {}]   ;;  %s4914_s2 = inlined_call_operand.hbm [shape: f32[1,32], index: 2, kind: input, shape index: {}]   ;;  %s4915_s3 = inlined_call_operand.hbm [shape: f32[1,32], index: 3, kind: input, shape index: {}]   ;;  %s4916_s4 = inlined_call_operand.hbm [shape: f32[9,32], index: 4, kind: input, shape index: {}]   ;;  %s4917_s5 = inlined_call_operand.hbm [shape: f32[1,32], index: 5, kind: input, shape index: {}]   ;;  %s4918_s6 = inlined_call_operand.hbm [shape: f32[1,32], index: 6, kind: input, shape index: {}]   ;;  %s4919_s7 = inlined_call_operand.hbm [shape: bf16[32,8], index: 7, kind: input, shape index: {}]   ;;  %s4920_s8 = inlined_call_operand.hbm [shape: f32[1,8], index: 8, kind: input, shape index: {}]   ;;  %s4921_s9 = inlined_call_operand.hbm [shape: f32[1,8], index: 9, kind: input, shape index: {}]   ;;  %s4922_s10 = inlined_call_operand.hbm [shape: f32[2,16,16,8], index: 10, kind: output, shape index: {}]  }
   0x1   :  { %5007 = sst [smem:[#allocation101_spill]] %s4912_s0 }
   0x2   :  { %5008 = sst [smem:[#allocation102_spill]] %s4913_s1 }
   0x3   :  { %5009 = sst [smem:[#allocation103_spill]] %s4914_s2 }
   0x4   :  { %5010 = sst [smem:[#allocation104_spill]] %s4915_s3 }
   0x5   :  { %5011 = sst [smem:[#allocation105_spill]] %s4916_s4 }
   0x6   :  { %5012 = sst [smem:[#allocation106_spill]] %s4917_s5 }
   0x7   :  { %5013 = sst [smem:[#allocation107_spill]] %s4918_s6 }
   0x8   :  { %5014 = sst [smem:[#allocation108_spill]] %s4922_s10 }
   0x9   :  { %15 = vsyncpa [#allocation3], 0 }
   0xa   :  { %17 = vsyncpa [#allocation3 + $0x1], 0 }
   0xb   :  { %18 = vsyncpa [#allocation6], 0 }
   0xc   :  { %19 = vsyncpa [#allocation9], 0 }
   0xd   :  { %20 = vsyncpa [#allocation12], 0 }
   0xe   :  { %21 = vsyncpa [#allocation15], 0 }
   0xf   :  { %22 = vsyncpa [#allocation18], 0 }
  0x10   :  { %23 = vsyncpa [#allocation4], 0 }
  0x11   :  { %25 = vsyncpa [#allocation4 + $0x1], 0  ;;  %s3114_s13 = smov 0   ;;  %s3116_s14 = smov 0  }
  0x12   :  { %s3118_s15 = smov 0   ;;  %s3120_s16 = smov 0  }
  0x13   :  { %s3122_s17 = smov 0   ;;  %s3124_s18 = smov 0  }
  0x14   :  { %s3126_s19 = smov 0   ;;  %s3128_s20 = smov 0  }
  0x15   :  { %s3130_s21 = smov 0   ;;  %s3132_s22 = smov 0  }
  0x16   :  { %s3134_s23 = smov 0  }
  0x17 LB: > { %5015 = sst [smem:[#allocation27_spill]] %s3000_s13  ;;  %s4923_s24 = sadd.s32 4294967295, %s3040_s23   ;;  %s3040_s23 = sphi %s3134_s23, %s31_s23   ;;  %s3036_s22 = sphi %s3132_s22, %s5260_s22   ;;  %s3032_s21 = sphi %s3130_s21, %s5259_s21   ;;  %s3028_s20 = sphi %s3128_s20, %s5258_s20   ;;  %s3024_s19 = sphi %s3126_s19, %s5257_s19   ;;  %s3020_s18 = sphi %s3124_s18, %s5256_s18   ;;  %s3016_s17 = sphi %s3122_s17, %s5255_s17   ;;  %s3012_s16 = sphi %s3120_s16, %s5254_s16   ;;  %s3008_s15 = sphi %s3118_s15, %s5253_s15   ;;  %s3004_s14 = sphi %s3116_s14, %s5252_s14   ;;  %s3000_s13 = sphi %s3114_s13, %s5251_s13  }
  0x18   : > { %5016 = sst [smem:[#allocation28_spill]] %s3004_s14  ;;  %p2266_p0 = scmp.ge.s32.totalorder %s3040_s23, 1 }
  0x19   : > { %5017 = sst [smem:[#allocation29_spill]] %s3024_s19  ;;  %p3173_p1 = scmp.eq.s32.totalorder %s4923_s24, 0 }
  0x1a   : > { %5018 = sst [smem:[#allocation30_spill]] %s3028_s20  ;;  %p291_p2 = scmp.lt.s32.totalorder %s3040_s23, 5 }
  0x1b   : > { %s5019_s25 = scalar_select %p3173_p1, 1, 0 }
  0x1c   : > { %p3178_p3 = pnand %p2266_p0, %p291_p2  ;;  %s3042_s27 = smov [#allocation5]  }
  0x1d   : > { %s304_s28 = sshll.u32 %s3042_s27, 4  ;;  %s3043_s29 = smov [#allocation8]   ;;  %s305_s28 = int_to_ptr.vmem [resolvable:$true] %s304_s28 }
  0x1e   : > { %s5020_s26 = scalar_select %p3178_p3, 1, 0 }
  0x1f   : > { %p2438_p4 = pneg %p3178_p3  ;;  %s326_s30 = sshll.u32 %s3043_s29, 4  ;;  %s3190_s30 = int_to_ptr.vmem [resolvable:$true] %s326_s30 }
  0x20   : > { %5021 = sst [smem:[#allocation31_spill]] %s5020_s26  ;;  %s3044_s12 = smov [#allocation11]  }
  0x21   : > { %p3186_p5 = pnand %p2438_p4, %p3173_p1  ;;  %s350_s24 = sshll.u32 %s3044_s12, 4  ;;  %s3192_s24 = int_to_ptr.vmem [resolvable:$true] %s350_s24 }
  0x22   : > { %s5023_s1 = sld [smem:[#allocation102_spill]] }
  0x23   : > { %p3202_p7 = pneg %p3186_p5 }
  0x28   : > { %s2616_s27 = scalar_lea.hbm %s5023_s1, 64 }
  0x29   : > { %p2617_p6 = scmp.ne.s32.totalorder %s5023_s1, %s2616_s27  ;;  %p2623_p10 = scmp.lt.u32.totalorder %s2616_s27, %s5023_s1 }
  0x2b   : > { %p2619_p8 = pnand %p3202_p7, %p2617_p6 }
  0x2d   : > { %p2620_p9 = pneg %p2619_p8 }
  0x2f   : > { %p2625_p11 = pnand %p2623_p10, %p2620_p9 }
  0x31   : > { %2628 = shalt.err (!%p2625_p11)
}
  0x32   : > { %s2629_s10 = scalar_lea.vmem %s305_s28, 64  ;;  %p2637_p2 = scmp.lt.s32.totalorder %s305_s28, %s305_s28 }
  0x33   : > { %p2630_p12 = scmp.ne.s32.totalorder %s305_s28, %s2629_s10  ;;  %p2638_p4 = scmp.lt.s32.totalorder %s2629_s10, %s2629_s10 }
  0x35   : > { %p2632_p13 = pnand %p2630_p12, %p3202_p7  ;;  %p2639_p3 = por %p2638_p4, %p2637_p2 }
  0x37   : > { %p2633_p0 = pneg %p2632_p13 }
  0x39   : > { %p2640_p1 = pnand %p2639_p3, %p2633_p0 }
  0x3b   : > { %2643 = shalt.err (!%p2640_p1)
}
  0x3c   : > { %2441 = dma.hbm_to_vmem [thread:$0]  (!%p3186_p5), %s5023_s1, 64, %s305_s28, [#allocation6]  }
  0x3d   : > { %s5025_s3 = sld [smem:[#allocation104_spill]] }
  0x43   : > { %s2644_s27 = scalar_lea.hbm %s5025_s3, 16 }
  0x44   : > { %p2645_p6 = scmp.ne.s32.totalorder %s5025_s3, %s2644_s27  ;;  %p2651_p1 = scmp.lt.u32.totalorder %s2644_s27, %s5025_s3 }
  0x46   : > { %p2647_p8 = pnand %p2645_p6, %p3202_p7 }
  0x48   : > { %p2648_p9 = pneg %p2647_p8 }
  0x4a   : > { %p2653_p3 = pnand %p2651_p1, %p2648_p9 }
  0x4c   : > { %2656 = shalt.err (!%p2653_p3)
}
  0x4d   : > { %s2657_s28 = scalar_lea.vmem %s3190_s30, 16  ;;  %s2664_s13 = scalar_lea.vmem %s3190_s30, 32 }
  0x4e   : > { %p2658_p10 = scmp.ne.s32.totalorder %s3190_s30, %s2657_s28  ;;  %p2665_p13 = scmp.lt.s32.totalorder %s3190_s30, %s3190_s30 }
  0x4f   : > { %p2666_p0 = scmp.lt.s32.totalorder %s2664_s13, %s2657_s28 }
  0x50   : > { %p2660_p11 = pnand %p2658_p10, %p3202_p7 }
  0x51   : > { %p2667_p2 = por %p2666_p0, %p2665_p13 }
  0x52   : > { %p2661_p12 = pneg %p2660_p11 }
  0x54   : > { %p2668_p4 = pnand %p2667_p2, %p2661_p12 }
  0x56   : > { %2671 = shalt.err (!%p2668_p4)
}
  0x57   : > { %2447 = dma.hbm_to_vmem [thread:$0]  (!%p3186_p5), %s5025_s3, 16, %s3190_s30, [#allocation9]  }
  0x58   : > { %s5026_s5 = sld [smem:[#allocation106_spill]] }
  0x5e   : > { %s2672_s26 = scalar_lea.hbm %s5026_s5, 16 }
  0x5f   : > { %p2673_p6 = scmp.ne.s32.totalorder %s5026_s5, %s2672_s26  ;;  %p2679_p1 = scmp.lt.u32.totalorder %s2672_s26, %s5026_s5 }
  0x61   : > { %p2675_p8 = pnand %p2673_p6, %p3202_p7 }
  0x63   : > { %p2676_p9 = pneg %p2675_p8 }
  0x65   : > { %p2681_p3 = pnand %p2679_p1, %p2676_p9 }
  0x67   : > { %2684 = shalt.err (!%p2681_p3)
}
  0x68   : > { %s2685_s30 = scalar_lea.vmem %s3192_s24, 16  ;;  %s2692_s13 = scalar_lea.vmem %s3192_s24, 32 }
  0x69   : > { %p2686_p10 = scmp.ne.s32.totalorder %s3192_s24, %s2685_s30  ;;  %p2693_p13 = scmp.lt.s32.totalorder %s3192_s24, %s3192_s24 }
  0x6a   : > { %p2694_p0 = scmp.lt.s32.totalorder %s2692_s13, %s2685_s30 }
  0x6b   : > { %p2688_p11 = pnand %p2686_p10, %p3202_p7 }
  0x6c   : > { %p2695_p2 = por %p2694_p0, %p2693_p13 }
  0x6d   : > { %p2689_p12 = pneg %p2688_p11 }
  0x6f   : > { %p2696_p4 = pnand %p2695_p2, %p2689_p12 }
  0x71   : > { %2699 = shalt.err (!%p2696_p4)
}
  0x72   : > { %2453 = dma.hbm_to_vmem [thread:$0]  (!%p3186_p5), %s5026_s5, 16, %s3192_s24, [#allocation12]  }
  0x73   : > { %s3045_s20 = smov [#allocation14]   ;;  %s2700_s12 = scalar_lea.hbm %s4919_s7, 256 }
  0x74   : > { %s371_s0 = sshll.u32 %s3045_s20, 4  ;;  %p2701_p6 = scmp.ne.s32.totalorder %s4919_s7, %s2700_s12  ;;  %s372_s0 = int_to_ptr.vmem [resolvable:$true] %s371_s0 }
  0x75   : > { %p2707_p1 = scmp.lt.u32.totalorder %s2700_s12, %s4919_s7 }
  0x76   : > { %p2703_p8 = pnand %p2701_p6, %p3202_p7 }
  0x78   : > { %p2704_p9 = pneg %p2703_p8 }
  0x7a   : > { %p2709_p3 = pnand %p2707_p1, %p2704_p9 }
  0x7c   : > { %2712 = shalt.err (!%p2709_p3)
}
  0x7d   : > { %s2713_s24 = scalar_lea.vmem %s372_s0, 256  ;;  %p2721_p13 = scmp.lt.s32.totalorder %s372_s0, %s372_s0 }
  0x7e   : > { %p2714_p10 = scmp.ne.s32.totalorder %s372_s0, %s2713_s24  ;;  %p2722_p0 = scmp.lt.s32.totalorder %s2713_s24, %s2713_s24 }
  0x80   : > { %p2716_p11 = pnand %p2714_p10, %p3202_p7  ;;  %p2723_p2 = por %p2722_p0, %p2721_p13 }
  0x82   : > { %p2717_p12 = pneg %p2716_p11 }
  0x84   : > { %p2724_p4 = pnand %p2723_p2, %p2717_p12 }
  0x86   : > { %2727 = shalt.err (!%p2724_p4)
}
  0x87   : > { %s3046_s14 = smov 64   ;;  %s3047_s19 = smov 4  }
  0x88   : > { %2459 = dma.hbm_to_vmem [thread:$0]  (!%p3186_p5), %s4919_s7, 256, %s372_s0, [#allocation15], %s3046_s14, %s3046_s14, %s3047_s19  }
  0x89   : > { %s3048_s27 = smov [#allocation7]   ;;  %s3049_s10 = smov [#allocation10]  }
  0x8a   : > { %s315_s12 = sshll.u32 %s3048_s27, 4  ;;  %s336_s28 = sshll.u32 %s3049_s10, 4  ;;  %s316_s12 = int_to_ptr.vmem [resolvable:$true] %s315_s12  ;;  %s3284_s28 = int_to_ptr.vmem [resolvable:$true] %s336_s28 }
  0x8b   : > { %s5027_s2 = sld [smem:[#allocation103_spill]] }
  0x91   : > { %s2728_s24 = scalar_lea.hbm %s5027_s2, 16 }
  0x92   : > { %p2729_p6 = scmp.ne.s32.totalorder %s5027_s2, %s2728_s24  ;;  %p2735_p1 = scmp.lt.u32.totalorder %s2728_s24, %s5027_s2 }
  0x94   : > { %p2731_p8 = pnand %p2729_p6, %p3202_p7 }
  0x96   : > { %p2732_p9 = pneg %p2731_p8 }
  0x98   : > { %p2737_p3 = pnand %p2735_p1, %p2732_p9 }
  0x9a   : > { %2740 = shalt.err (!%p2737_p3)
}
  0x9b   : > { %s2741_s14 = scalar_lea.vmem %s316_s12, 16  ;;  %s2748_s19 = scalar_lea.vmem %s316_s12, 32 }
  0x9c   : > { %p2742_p10 = scmp.ne.s32.totalorder %s316_s12, %s2741_s14  ;;  %p2749_p13 = scmp.lt.s32.totalorder %s316_s12, %s316_s12 }
  0x9d   : > { %p2750_p0 = scmp.lt.s32.totalorder %s2748_s19, %s2741_s14 }
  0x9e   : > { %p2744_p11 = pnand %p2742_p10, %p3202_p7 }
  0x9f   : > { %p2751_p2 = por %p2750_p0, %p2749_p13 }
  0xa0   : > { %p2745_p12 = pneg %p2744_p11 }
  0xa2   : > { %p2752_p4 = pnand %p2751_p2, %p2745_p12 }
  0xa4   : > { %2755 = shalt.err (!%p2752_p4)
}
  0xa5   : > { %2444 = dma.hbm_to_vmem [thread:$0]  (!%p3186_p5), %s5027_s2, 16, %s316_s12, [#allocation6]  }
  0xa6   : > { %s5028_s4 = sld [smem:[#allocation105_spill]] }
  0xac   : > { %s2756_s10 = scalar_lea.hbm %s5028_s4, 256 }
  0xad   : > { %p2757_p6 = scmp.ne.s32.totalorder %s5028_s4, %s2756_s10  ;;  %p2763_p1 = scmp.lt.u32.totalorder %s2756_s10, %s5028_s4 }
  0xaf   : > { %p2759_p8 = pnand %p2757_p6, %p3202_p7 }
  0xb1   : > { %p2760_p9 = pneg %p2759_p8 }
  0xb3   : > { %p2765_p3 = pnand %p2763_p1, %p2760_p9 }
  0xb5   : > { %2768 = shalt.err (!%p2765_p3)
}
  0xb6   : > { %s2769_s12 = scalar_lea.vmem %s3284_s28, 256  ;;  %p2777_p13 = scmp.lt.s32.totalorder %s3284_s28, %s3284_s28 }
  0xb7   : > { %p2770_p10 = scmp.ne.s32.totalorder %s3284_s28, %s2769_s12  ;;  %p2778_p0 = scmp.lt.s32.totalorder %s2769_s12, %s2769_s12 }
  0xb9   : > { %p2772_p11 = pnand %p2770_p10, %p3202_p7  ;;  %p2779_p2 = por %p2778_p0, %p2777_p13 }
  0xbb   : > { %p2773_p12 = pneg %p2772_p11 }
  0xbd   : > { %p2780_p4 = pnand %p2779_p2, %p2773_p12 }
  0xbf   : > { %2783 = shalt.err (!%p2780_p4)
}
  0xc0   : > { %s4933_s0 = smov 128   ;;  %s4934_s14 = smov 8  }
  0xc1   : > { %2450 = dma.hbm_to_vmem [thread:$0]  (!%p3186_p5), %s5028_s4, 256, %s3284_s28, [#allocation9], %s4933_s0, %s4933_s0, %s4934_s14  }
  0xc2   : > { %s3052_s3 = smov [#allocation13]   ;;  %s3053_s27 = smov [#allocation16]  }
  0xc3   : > { %s361_s26 = sshll.u32 %s3052_s3, 4  ;;  %s385_s10 = sshll.u32 %s3053_s27, 4  ;;  %s362_s26 = int_to_ptr.vmem [resolvable:$true] %s361_s26  ;;  %s3330_s10 = int_to_ptr.vmem [resolvable:$true] %s385_s10 }
  0xc4   : > { %s5029_s6 = sld [smem:[#allocation107_spill]] }
  0xca   : > { %s2784_s24 = scalar_lea.hbm %s5029_s6, 16 }
  0xcb   : > { %p2785_p6 = scmp.ne.s32.totalorder %s5029_s6, %s2784_s24  ;;  %p2791_p1 = scmp.lt.u32.totalorder %s2784_s24, %s5029_s6 }
  0xcd   : > { %p2787_p8 = pnand %p2785_p6, %p3202_p7 }
  0xcf   : > { %p2788_p9 = pneg %p2787_p8 }
  0xd1   : > { %p2793_p3 = pnand %p2791_p1, %p2788_p9 }
  0xd3   : > { %2796 = shalt.err (!%p2793_p3)
}
  0xd4   : > { %s2797_s1 = scalar_lea.vmem %s362_s26, 16  ;;  %s2804_s3 = scalar_lea.vmem %s362_s26, 32 }
  0xd5   : > { %p2798_p10 = scmp.ne.s32.totalorder %s362_s26, %s2797_s1  ;;  %p2805_p13 = scmp.lt.s32.totalorder %s362_s26, %s362_s26 }
  0xd6   : > { %p2806_p0 = scmp.lt.s32.totalorder %s2804_s3, %s2797_s1 }
  0xd7   : > { %p2800_p11 = pnand %p2798_p10, %p3202_p7 }
  0xd8   : > { %p2807_p2 = por %p2806_p0, %p2805_p13 }
  0xd9   : > { %p2801_p12 = pneg %p2800_p11 }
  0xdb   : > { %p2808_p4 = pnand %p2807_p2, %p2801_p12 }
  0xdd   : > { %2811 = shalt.err (!%p2808_p4)
}
  0xde   : > { %2456 = dma.hbm_to_vmem [thread:$0]  (!%p3186_p5), %s5029_s6, 16, %s362_s26, [#allocation12]  }
  0xdf   : > { %s2812_s20 = scalar_lea.hbm %s4920_s8, 16 }
  0xe0   : > { %p2813_p6 = scmp.ne.s32.totalorder %s4920_s8, %s2812_s20  ;;  %p2819_p1 = scmp.lt.u32.totalorder %s2812_s20, %s4920_s8 }
  0xe2   : > { %p2815_p8 = pnand %p2813_p6, %p3202_p7 }
  0xe4   : > { %p2816_p9 = pneg %p2815_p8 }
  0xe6   : > { %p2821_p3 = pnand %p2819_p1, %p2816_p9 }
  0xe8   : > { %2824 = shalt.err (!%p2821_p3)
}
  0xe9   : > { %s2825_s26 = scalar_lea.vmem %s3330_s10, 16  ;;  %s2832_s3 = scalar_lea.vmem %s3330_s10, 32 }
  0xea   : > { %p2826_p10 = scmp.ne.s32.totalorder %s3330_s10, %s2825_s26  ;;  %p2833_p13 = scmp.lt.s32.totalorder %s3330_s10, %s3330_s10 }
  0xeb   : > { %p2834_p0 = scmp.lt.s32.totalorder %s2832_s3, %s2825_s26 }
  0xec   : > { %p2828_p11 = pnand %p2826_p10, %p3202_p7 }
  0xed   : > { %p2835_p2 = por %p2834_p0, %p2833_p13 }
  0xee   : > { %p2829_p12 = pneg %p2828_p11 }
  0xf0   : > { %p2836_p4 = pnand %p2835_p2, %p2829_p12 }
  0xf2   : > { %2839 = shalt.err (!%p2836_p4)
}
  0xf3   : > { %2462 = dma.hbm_to_vmem [thread:$0]  (!%p3186_p5), %s4920_s8, 16, %s3330_s10, [#allocation15]  }
  0xf4   : > { %s3054_s13 = smov [#allocation17]   ;;  %s2840_s19 = scalar_lea.hbm %s4921_s9, 16 }
  0xf5   : > { %s396_s24 = sshll.u32 %s3054_s13, 4  ;;  %p2841_p6 = scmp.ne.s32.totalorder %s4921_s9, %s2840_s19  ;;  %s397_s24 = int_to_ptr.vmem [resolvable:$true] %s396_s24 }
  0xf6   : > { %p2847_p1 = scmp.lt.u32.totalorder %s2840_s19, %s4921_s9 }
  0xf7   : > { %p2843_p8 = pnand %p2841_p6, %p3202_p7 }
  0xf9   : > { %p2844_p9 = pneg %p2843_p8 }
  0xfb   : > { %p2849_p3 = pnand %p2847_p1, %p2844_p9 }
  0xfd   : > { %2852 = shalt.err (!%p2849_p3)
}
  0xfe   : > { %s2853_s10 = scalar_lea.vmem %s397_s24, 16  ;;  %s2860_s27 = scalar_lea.vmem %s397_s24, 32 }
  0xff   : > { %p2854_p10 = scmp.ne.s32.totalorder %s397_s24, %s2853_s10  ;;  %p2861_p13 = scmp.lt.s32.totalorder %s397_s24, %s397_s24 }
 0x100   : > { %p2862_p0 = scmp.lt.s32.totalorder %s2860_s27, %s2853_s10 }
 0x101   : > { %p2856_p11 = pnand %p2854_p10, %p3202_p7 }
 0x102   : > { %p2863_p2 = por %p2862_p0, %p2861_p13 }
 0x103   : > { %p2857_p12 = pneg %p2856_p11 }
 0x105   : > { %p2864_p4 = pnand %p2863_p2, %p2857_p12 }
 0x107   : > { %2867 = shalt.err (!%p2864_p4)
}
 0x108   : > { %2465 = dma.hbm_to_vmem [thread:$0]  (!%p3186_p5), %s4921_s9, 16, %s397_s24, [#allocation18]  }
 0x109   : > { %s2265_s29 = sadd.s32 4294967294, %s3040_s23   ;;  %s5030_s20 = sld [smem:[#allocation28_spill]] }
 0x10a   : > { %s40_s11 = sadd.s32 1, %s3032_s21  ;;  %s43_s12 = sadd.s32 1, %s3036_s22 }
 0x10b   : > { %p41_p7 = scmp.ge.s32.totalorder %s40_s11, 2  ;;  %s5031_s19 = sld [smem:[#allocation27_spill]] }
 0x10c   : > { %s50_s28 = sadd.s32 1, %s3020_s18  ;;  %p57_p6 = scmp.ne.s32.totalorder %s3020_s18, %s3016_s17 }
 0x10d   : > { %p58_p8 = scmp.eq.s32.totalorder %s3040_s23, 0  ;;  %s5262_s11 = smov (%p41_p7, %s40_s11), 0 }
 0x10e   : > { %s5264_s12 = smov (!%p41_p7, %s43_s12), %s3036_s22  ;;  %p63_p5 = scmp.ne.s32.totalorder %s3016_s17, %s3012_s16 }
 0x10f   : > { %p3402_p9 = por %p58_p8, %p57_p6  ;;  %p45_p1 = scmp.ge.s32.totalorder %s5264_s12, 2 }
 0x110   : > { %s263_s1 = ssub.s32 %s3032_s21, %s5262_s11  ;;  %p5033_p3 = scmp.ne.s32.totalorder %s5019_s25, 0 }
 0x111   : > { %s267_s3 = sadd.s32 1, %s3008_s15  ;;  %s5266_s12 = smov (%p45_p1, %s5264_s12), 0 }
 0x112   : > { %p3412_p10 = por %p5033_p3, %p63_p5  ;;  %p277_p11 = scmp.ne.s32.totalorder %s3008_s15, %s5030_s20 }
 0x113   : > { %s5035_s10 = sadd.s32 4294967295, %s3040_s23   ;;  %s47_s27 = ssub.s32 %s3036_s22, %s5266_s12 }
 0x114   : > { %p278_p12 = scmp.eq.s32.totalorder %s5035_s10, 3  ;;  %p283_p13 = scmp.ne.s32.totalorder %s5030_s20, %s5031_s19 }
 0x115   : > { %p48_p0 = scmp.eq.s32.totalorder %s47_s27, 0  ;;  %s264_s16 = sor.u32 %s263_s1, %s47_s27 }
 0x116   : > { %p265_p2 = scmp.eq.s32.totalorder %s264_s16, 0  ;;  %p3427_p4 = por %p278_p12, %p277_p11 }
 0x117   : > { %s3432_s13 = scalar_select %p48_p0, %s3020_s18, %s50_s28  }
 0x118   : > { %s5036_s30 = scalar_select %p3427_p4, 1, 0 }
 0x119   : > { %s3435_s0 = scalar_select %p265_p2, %s3008_s15, %s267_s3  }
 0x11a   : > { %p284_p7 = scmp.eq.s32.totalorder %s2265_s29, 3  ;;  %p2483_p6 = scmp.lt.s32.totalorder %s3040_s23, 4 }
 0x11b   : > { %s407_s14 = sand.u32 1, %s3020_s18   ;;  %s2331_s2 = sshll.u32 %s3036_s22, 12 }
 0x11c   : > { %p3440_p8 = por %p284_p7, %p283_p13  ;;  %s2277_s20 = sshll.u32 %s407_s14, 8 }
 0x11d   : > { %s5038_s27 = sld [smem:[#allocation101_spill]]  ;;  %p3451_p5 = pnand %p2483_p6, %p3402_p9 }
 0x11e   : > { %s5037_s10 = scalar_select %p3440_p8, 1, 0 }
 0x11f   : > { %s411_s28 = scalar_lea.vmem [#allocation2], %s2277_s20  ;;  %s3457_s4 = scalar_lea.sflag [#allocation3], %s407_s14 }
 0x120   : > { %s418_s3 = sshll.u32 %s411_s28, 4  ;;  %p2870_p3 = pneg %p3451_p5  ;;  %s3455_s3 = int_to_ptr.vmem [resolvable:$true] %s418_s3 }
 0x123   : > { %s3447_s16 = scalar_lea.hbm %s5038_s27, %s2331_s2  ;;  %s2873_s1 = scalar_lea.hbm %s5038_s27, 8192 }
 0x124   : > { %s2868_s19 = scalar_lea.hbm %s3447_s16, 4096  ;;  %p2874_p9 = scmp.lt.u32.totalorder %s3447_s16, %s5038_s27 }
 0x125   : > { %p2869_p1 = scmp.ne.s32.totalorder %s3447_s16, %s2868_s19  ;;  %p2875_p13 = scmp.lt.u32.totalorder %s2873_s1, %s2868_s19 }
 0x126   : > { %p2877_p2 = scmp.lt.u32.totalorder %s2868_s19, %s3447_s16 }
 0x127   : > { %p2871_p11 = pnand %p2870_p3, %p2869_p1  ;;  %p2876_p0 = por %p2875_p13, %p2874_p9 }
 0x129   : > { %p2872_p12 = pneg %p2871_p11  ;;  %p2878_p7 = por %p2877_p2, %p2876_p0 }
 0x12b   : > { %p2879_p6 = pnand %p2878_p7, %p2872_p12 }
 0x12d   : > { %2882 = shalt.err (!%p2879_p6)
}
 0x12e   : > { %s2883_s14 = scalar_lea.vmem %s3455_s3, 4096  ;;  %s3055_s20 = smov [#allocation2]  }
 0x12f   : > { %p2884_p1 = scmp.ne.s32.totalorder %s3455_s3, %s2883_s14  ;;  %s2888_s28 = sshll.u32 %s3055_s20, 4  ;;  %s2889_s28 = int_to_ptr.vmem [resolvable:$false] %s2888_s28 }
 0x130   : > { %s2890_s5 = scalar_lea.vmem %s2889_s28, 8192  ;;  %p2891_p4 = scmp.lt.s32.totalorder %s3455_s3, %s2889_s28 }
 0x131   : > { %p2886_p11 = pnand %p2884_p1, %p2870_p3  ;;  %p2892_p9 = scmp.lt.s32.totalorder %s2890_s5, %s2883_s14 }
 0x133   : > { %p2887_p8 = pneg %p2886_p11  ;;  %p2893_p13 = por %p2892_p9, %p2891_p4 }
 0x135   : > { %p2894_p0 = pnand %p2893_p13, %p2887_p8 }
 0x137   : > { %2897 = shalt.err (!%p2894_p0)
}
 0x138   : > { %s5040_s6 = smov 8   ;;  %s5041_s19 = smov 128  }
 0x139   : > { %2469 = dma.hbm_to_vmem [thread:$0]  (!%p3451_p5), %s3447_s16, 4096, %s3455_s3, %s3457_s4, %s5041_s19, %s5041_s19, %s5040_s6  }
 0x13a   : > { %s5042_s2 = sld [smem:[#allocation31_spill]] }
 0x140   : > { %p5043_p3 = scmp.ne.s32.totalorder %s5042_s2, 0 }
 0x142   : > { %430 = sbr.rel (%p5043_p3) target bundleno = 1028 (0x404), region = 60 }
 0x149   : > { %s432_s24 = sand.u32 1, %s3016_s17  }
 0x14a   : > { %s2281_s1 = sshll.u32 %s432_s24, 8  ;;  %s433_s14 = scalar_lea.sflag [#allocation3], %s432_s24 }
 0x14b   : > { %s3491_s20 = scalar_lea.vmem [#allocation2], %s2281_s1 }
 0x14c   : > { %2971 = dma.done.wait (%p3412_p10), %s433_s14, 4096  }
 0x14d   : > { %2973 = vsyncadd (%p3412_p10), %s433_s14, 4294963200  ;;  %p5044_p4 = scmp.ne.s32.totalorder %s5019_s25, 0 }
 0x14f   : > { %2975 = dma.done.wait (%p5044_p4), [#allocation6], 80  }
 0x150   : > { %2977 = vsyncadd (%p5044_p4), [#allocation6], 4294967216 }
 0x151   : > { %2979 = dma.done.wait (%p5044_p4), [#allocation9], 272  }
 0x152   : > { %2981 = vsyncadd (%p5044_p4), [#allocation9], 4294967024 }
 0x153   : > { %2983 = dma.done.wait (%p5044_p4), [#allocation12], 32  }
 0x154   : > { %2985 = vsyncadd (%p5044_p4), [#allocation12], 4294967264 }
 0x155   : > { %2987 = dma.done.wait (%p5044_p4), [#allocation15], 272  }
 0x156   : > { %2989 = vsyncadd (%p5044_p4), [#allocation15], 4294967024 }
 0x157   : > { %2991 = dma.done.wait (%p5044_p4), [#allocation18], 16  }
 0x158   : > { %2993 = vsyncadd (%p5044_p4), [#allocation18], 4294967280  ;;  %s5045_s4 = sld [smem:[#allocation29_spill]]  ;;  %vm592_vm0 = vcmask 1043456   ;;  %v560_v0 = vld [vmem:[#allocation5] sm:$0xf]  ;;  %v912_v32 = vlaneseq }
 0x159   : > { %2397 = vmatprep.subr.msk.bf16.mxu0 %vm592_vm0, %v560_v0  ;;  %v594_v3 = vsel %vm592_vm0, %v560_v0, 0  ;;  %vm561_vm1 = vcmask 64512   ;;  %v2597_v34 = vld [vmem:[#allocation14] sm:$0xff]   ;;  %v3563_v35 = vld [vmem:[#allocation7] ss:$0 sm:$0xff]  ;;  %v809_v40 = vld [vmem:[#allocation10] sm:$0xff] }
 0x15a   : > { %2356 = vmatpush3.bf16.msra.mxu0 %v594_v3  ;;  %v913_v33 = vshrl.u32 %v912_v32, 7  ;;  %2377 = vmatprep.subr.bf16.mxu1 %v2597_v34  ;;  %v3568_v37 = vld [vmem:[#allocation8] ss:$0 sm:$0xff]  ;;  %vm831_vm2 = vcmask 1040384   ;;  %vm1000_vm3 = vcmask 1046528   ;;  %vm1125_vm4 = vcmask 1045504  }
 0x15b   : > { %2378 = vmatpush3.bf16.msra.mxu1 %v2597_v34  ;;  %v2598_v44 = vld [vmem:[#allocation14 + $0x8] sm:$0xff]   ;;  %vm1868_vm5 = vcmask 261120   ;;  %p5246_p7 = scmp.ne.s32.totalorder %s5036_s30, 0 }
 0x15c   : > { %v914_v38 = vsub.s32 0, %v913_v33  ;;  %v950_v41 = vsub.s32 1, %v913_v33  ;;  %v1075_v42 = vsub.s32 2, %v913_v33  ;;  %v1200_v45 = vsub.s32 3, %v913_v33  ;;  %2379 = vmatprep.subr.bf16.mxu1 %v2598_v44 }
 0x15d   : > { %v1236_v49 = vsub.s32 4, %v913_v33  ;;  %v1360_v50 = vsub.s32 5, %v913_v33  ;;  %v1520_v54 = vsub.s32 7, %v913_v33  ;;  %v1484_v0 = vsub.s32 6, %v913_v33 }
 0x15e   : > { %s2292_s26 = sshll.u32 %s5045_s4, 3  ;;  %s2332_s16 = sshll.u32 %s5045_s4, 7  ;;  %v3579_v53 = vrot.slane %v809_v40, %v914_v38  ;;  %v3583_v58 = vrot.slane %v809_v40, %v950_v41  ;;  %v3585_v59 = vrot.slane %v809_v40, %v1075_v42  ;;  %v3588_v61 = vrot.slane %v809_v40, %v1200_v45  ;;  %v3806_v42 = vld [vmem:[#allocation10 + $0x8] ss:$0 sm:$0xff] }
 0x15f   : > { %s3521_s29 = sadd.s32 4294967295, %s2292_s26  ;;  %s3525_s3 = scalar_lea.vmem %s3491_s20, %s2332_s16 [#allocation2]  ;;  %2380 = vmatpush3.bf16.msra.mxu1 %v2598_v44 }
 0x160   : > { %p513_p10 = scmp.gt.s32.totalorder %s3521_s29, 0  ;;  %v530_v1 = vld [vmem:[%s3525_s3] sm:$0xff]  ;;  %v531_v2 = vld [vmem:[%s3525_s3 + $0x8] sm:$0xff]  ;;  %v532_v7 = vld [vmem:[%s3525_s3 + $0x10] sm:$0xff]  ;;  %s3542_s6 = sadd.s32 8, %s2292_s26 }
 0x161   : > { %v551_v6 = vpack.c.bf16 %v531_v2, %v530_v1  ;;  %v533_v9 = vld [vmem:[%s3525_s3 + $0x18] sm:$0xff]  ;;  %v534_v11 = vld [vmem:[%s3525_s3 + $0x20] sm:$0xff]  ;;  %v535_v12 = vld [vmem:[%s3525_s3 + $0x28] sm:$0xff]  ;;  %p516_p8 = scmp.lt.s32.totalorder %s3542_s6, 15  ;;  %p518_p5 = scmp.ge.s32.totalorder %s3521_s29, 0  ;;  %v3592_v2 = vrot.slane %v809_v40, %v1236_v49 }
 0x162   : > { %s514_s25 = scalar_select %p513_p10, %s3521_s29, 0  ;;  %v552_v10 = vpack.c.bf16 %v533_v9, %v532_v7  ;;  %v536_v13 = vld [vmem:[%s3525_s3 + $0x30] sm:$0xff]  ;;  %v537_v14 = vld [vmem:[%s3525_s3 + $0x38] sm:$0xff]  ;;  %v553_v15 = vpack.c.bf16 %v535_v12, %v534_v11  ;;  %v538_v17 = vld [vmem:[%s3525_s3 + $0x40] sm:$0xff] }
 0x163   : > { %v554_v16 = vpack.c.bf16 %v537_v14, %v536_v13  ;;  %v539_v18 = vld [vmem:[%s3525_s3 + $0x48] sm:$0xff]  ;;  %v540_v19 = vld [vmem:[%s3525_s3 + $0x50] sm:$0xff]  ;;  %v541_v20 = vld [vmem:[%s3525_s3 + $0x58] sm:$0xff]  ;;  %s517_s19 = scalar_select %p516_p8, %s3542_s6, 15 }
 0x164   : > { %s2294_s28 = sshll.u32 %s514_s25, 4  ;;  %v555_v21 = vpack.c.bf16 %v539_v18, %v538_v17  ;;  %v556_v22 = vpack.c.bf16 %v541_v20, %v540_v19  ;;  %v542_v23 = vld [vmem:[%s3525_s3 + $0x60] sm:$0xff]  ;;  %v543_v24 = vld [vmem:[%s3525_s3 + $0x68] sm:$0xff]  ;;  %v544_v25 = vld [vmem:[%s3525_s3 + $0x70] sm:$0xff]  ;;  %p521_p12 = scmp.lt.s32.totalorder %s3542_s6, 16  ;;  %v3606_v18 = vrot.slane %v809_v40, %v1484_v0 }
 0x165   : > { %s525_s5 = scalar_lea.vmem %s3491_s20, %s2294_s28 [#allocation2]  ;;  %v545_v26 = vld [vmem:[%s3525_s3 + $0x78] sm:$0xff]  ;;  %s2296_s2 = sshll.u32 %s517_s19, 4  ;;  %v557_v27 = vpack.c.bf16 %v543_v24, %v542_v23 }
 0x166   : > { %v526_v4 = vld [vmem:[%s525_s5] sm:$0xff]  ;;  %v527_v5 = vld [vmem:[%s525_s5 + $0x8] sm:$0xff]  ;;  %v558_v28 = vpack.c.bf16 %v545_v26, %v544_v25  ;;  %s547_s24 = scalar_lea.vmem %s3491_s20, %s2296_s2 [#allocation2]  ;;  %s5242_s16 = sld [smem:[#allocation28_spill]] }
 0x167   : > { %v550_v8 = vpack.c.bf16 %v527_v5, %v526_v4  ;;  %v548_v29 = vld [vmem:[%s547_s24] sm:$0xff]  ;;  %v549_v30 = vld [vmem:[%s547_s24 + $0x8] sm:$0xff]  ;;  %s3566_s1 = scalar_select %p518_p5, 1, 0  ;;  %v3596_v5 = vrot.slane %v809_v40, %v1360_v50 }
 0x168   : > { %v559_v31 = vpack.c.bf16 %v549_v30, %v548_v29  ;;  %s3574_s14 = scalar_select %p521_p12, 1, 0 }
 0x169   : > { %2357 = vmatprep.mubr.msk.bf16.mxu0 %vm561_vm1, %v550_v8  ;;  %s520_s20 = scvt.s32.f32 %s3566_s1  ;;  %s5243_s5 = sld [smem:[#allocation30_spill]] }
 0x16a   : > { %2358 = vmatmul.mubr.msk.bf16.vlgmr.msra.gmra.mrb[0].mxu0 %vm561_vm1, %v551_v6  ;;  %s523_s26 = scvt.s32.f32 %s3574_s14  ;;  %v3598_v6 = vrot.slane %v809_v40, %v1520_v54  ;;  %s2333_s6 = sshll.u32 %s5045_s4, 4 }
 0x16b   : > { %2361 = vmatprep.mubr.msk.bf16.mxu0 %vm561_vm1, %v552_v10  ;;  %v3594_v3 = vstv %s520_s20  ;;  %s5244_s20 = sld [smem:[#allocation108_spill]] }
 0x16c   : > { %v3604_v17 = vstv %s523_s26  ;;  %s506_s29 = sand.u32 1, %s5242_s16  }
 0x16d   : > { %s2291_s25 = sshll.u32 %s506_s29, 7 }
 0x16e   : > { %s4767_s28 = scalar_lea.vmem [#allocation19], %s2291_s25 }
 0x16f   : > { %s2327_s19 = sshll.u32 %s5243_s5, 5  ;;  %s2085_s24 = sshll.u32 %s4767_s28, 4  ;;  %s4840_s24 = int_to_ptr.vmem [resolvable:$true] %s2085_s24 }
 0x170   : > { %s2082_s2 = sadd.s32 %s2333_s6, %s2327_s19  ;;  %s4851_s5 = scalar_lea.sflag [#allocation4], %s506_s29 }
 0x171   : > { %s2328_s4 = sshll.u32 %s2082_s2, 7  ;;  %s5245_s26 = smov %s5244_s20 }
 0x172   : > { %2362 = vmatmul.mubr.msk.bf16.gmra.mrb[4].mxu0 %vm561_vm1, %v553_v15  ;;  %s4838_s25 = scalar_lea.hbm %s5244_s20, %s2328_s4  ;;  %s2898_s6 = scalar_lea.vmem %s4840_s24, 2048 }
 0x173   : > { %2365 = vmatprep.mubr.msk.bf16.mxu0 %vm561_vm1, %v554_v16  ;;  %p2899_p2 = scmp.ne.s32.totalorder %s4840_s24, %s2898_s6  ;;  %s3056_s19 = smov [#allocation19]  }
 0x174   : > { %s2902_s2 = sshll.u32 %s3056_s19, 4  ;;  %s2903_s2 = int_to_ptr.vmem [resolvable:$false] %s2902_s2 }
 0x175   : > { %p2900_p6 = pnand %p2899_p2, %p5246_p7  ;;  %s2904_s4 = scalar_lea.vmem %s2903_s2, 4096 }
 0x176   : > { %p2905_p11 = scmp.lt.s32.totalorder %s4840_s24, %s2903_s2  ;;  %p2906_p9 = scmp.lt.s32.totalorder %s2904_s4, %s2898_s6 }
 0x177   : > { %p2901_p1 = pneg %p2900_p6 }
 0x178   : > { %p2907_p13 = por %p2906_p9, %p2905_p11 }
 0x17a   : > { %2366 = vmatmul.mubr.msk.bf16.gmra.mrb[8].mxu0 %vm561_vm1, %v555_v21  ;;  %p2908_p0 = pnand %p2907_p13, %p2901_p1 }
 0x17b   : > { %2369 = vmatprep.mubr.msk.bf16.mxu0 %vm561_vm1, %v556_v22 }
 0x182   : > { %2370 = vmatmul.mubr.msk.bf16.gmra.mrb[12].mxu0 %vm561_vm1, %v557_v27 }
 0x183   : > { %2373 = vmatprep.mubr.msk.bf16.mxu0 %vm561_vm1, %v558_v28 }
 0x18a   : > { %2374 = vmatmul.mubr.msk.bf16.gmra.mrb[16].mxu0 %vm561_vm1, %v559_v31 }
 0x23d   : > { %v2359_v36 = vpop.f32.mrb[0].mxu0 }
 0x23e   : > { %v718_v39 = vmul.f32 %v2359_v36, %v3563_v35  ;;  %v630_v43 = vpop.f32.mrb[1].mxu0 }
 0x23f   : > { %v716_v46 = vmul.f32 %v3563_v35, %v630_v43  ;;  %v2360_v47 = vpop.f32.mrb[2].mxu0 }
 0x240   : > { %v745_v48 = vadd.f32 %v3568_v37, %v718_v39  ;;  %v719_v51 = vmul.f32 %v2360_v47, %v3563_v35  ;;  %v633_v52 = vpop.f32.mrb[3].mxu0 }
 0x241   : > { %v743_v55 = vadd.f32 %v3568_v37, %v716_v46  ;;  %v717_v56 = vmul.f32 %v3563_v35, %v633_v52 }
 0x242   : > { %v765_v57 = vmax.f32 %v745_v48, 0.0  ;;  %v746_v60 = vadd.f32 %v3568_v37, %v719_v51 }
 0x243   : > { %v763_v62 = vmax.f32 %v743_v55, 0.0  ;;  %v744_v63 = vadd.f32 %v3568_v37, %v717_v56 }
 0x244   : > { %v785_v1 = vmin.f32 %v765_v57, 6.0  ;;  %v766_v4 = vmax.f32 %v746_v60, 0.0 }
 0x245   : > { %v783_v7 = vmin.f32 %v763_v62, 6.0  ;;  %v764_v8 = vmax.f32 %v744_v63, 0.0  ;;  %v2363_v9 = vpop.f32.mrb[4].mxu0 }
 0x246   : > { %v835_v10 = vrot.slane %v785_v1, 7  ;;  %v786_v11 = vmin.f32 %v766_v4, 6.0  ;;  %v722_v12 = vmul.f32 %v2363_v9, %v3563_v35  ;;  %v646_v13 = vpop.f32.mrb[5].mxu0 }
 0x247   : > { %v3602_v14 = vmul.f32 %v3594_v3, %v783_v7  ;;  %v784_v15 = vmin.f32 %v764_v8, 6.0  ;;  %v2364_v16 = vpop.f32.mrb[6].mxu0  ;;  %v720_v22 = vmul.f32 %v3563_v35, %v646_v13 }
 0x248   : > { %v893_v19 = vsel %vm831_vm2, 0.0, %v835_v10  ;;  %v836_v20 = vrot.slane %v786_v11, 7  ;;  %v749_v21 = vadd.f32 %v3568_v37, %v722_v12  ;;  %v649_v23 = vpop.f32.mrb[7].mxu0  ;;  %v723_v27 = vmul.f32 %v2364_v16, %v3563_v35 }
 0x249   : > { %v918_v24 = vmul.f32 %v3579_v53, %v893_v19  ;;  %v955_v25 = vmul.f32 %v3583_v58, %v893_v19  ;;  %v1080_v26 = vmul.f32 %v3585_v59, %v893_v19  ;;  %v3616_v28 = vmul.f32 %v3592_v2, %v893_v19 }
 0x24a   : > { %v3619_v29 = vmul.f32 %v3596_v5, %v893_v19  ;;  %v832_v30 = vrot.slane %v3602_v14, 7  ;;  %v837_v31 = vsel %vm831_vm2, %v835_v10, %v836_v20  ;;  %v3624_v34 = vmul.f32 %v3588_v61, %v893_v19 }
 0x24b   : > { %v1006_v32 = vrot.slane %v955_v25, 1  ;;  %v1131_v33 = vrot.slane %v1080_v26, 2  ;;  %v903_v36 = vsel %vm831_vm2, %v836_v20, 0.0  ;;  %v919_v40 = vmul.f32 %v3579_v53, %v837_v31 }
 0x24c   : > { %v892_v39 = vsel %vm831_vm2, 0.0, %v832_v30  ;;  %v956_v41 = vmul.f32 %v3583_v58, %v837_v31  ;;  %v957_v45 = vmul.f32 %v3583_v58, %v903_v36  ;;  %v1081_v49 = vmul.f32 %v3585_v59, %v837_v31 }
 0x24d   : > { %v3633_v43 = vmul.f32 %v3579_v53, %v892_v39  ;;  %v3636_v44 = vmul.f32 %v3583_v58, %v892_v39  ;;  %v2367_v46 = vpop.f32.mrb[8].mxu0  ;;  %v3640_v47 = vmul.f32 %v3585_v59, %v892_v39  ;;  %v1082_v50 = vmul.f32 %v3585_v59, %v903_v36 }
 0x24e   : > { %v1007_v48 = vrot.slane %v956_v41, 1  ;;  %v662_v51 = vpop.f32.mrb[9].mxu0  ;;  %v1009_v54 = vrot.slane %v957_v45, 1  ;;  %v3646_v55 = vmul.f32 %v3588_v61, %v837_v31  ;;  %v3649_v56 = vmul.f32 %v3592_v2, %v837_v31 }
 0x24f   : > { %v1001_v52 = vrot.slane %v3636_v44, 1  ;;  %v3651_v57 = vpop.f32.mrb[10].mxu0  ;;  %v1132_v62 = vrot.slane %v1081_v49, 2  ;;  %v1134_v63 = vrot.slane %v1082_v50, 2  ;;  %v1240_v0 = vmul.f32 %v3592_v2, %v903_v36 }
 0x250   : > { %v1008_v60 = vsel %vm1000_vm3, %v1006_v32, %v1007_v48  ;;  %v3655_v1 = vpop.f32.mrb[11].mxu0  ;;  %v1010_v4 = vsel %vm1000_vm3, %v1007_v48, %v1009_v54  ;;  %v4937_v8 = vrot.slane %v3649_v56, 1  ;;  %v3660_v9 = vmul.f32 %v3596_v5, %v837_v31 }
 0x251   : > { %v1059_v7 = vadd.f32 %v1008_v60, %v918_v24  ;;  %v1060_v10 = vadd.f32 %v1010_v4, %v919_v40  ;;  %v1133_v11 = vsel %vm1125_vm4, %v1131_v33, %v1132_v62  ;;  %v1135_v12 = vsel %vm1125_vm4, %v1132_v62, %v1134_v63 }
 0x252   : > { %v1289_v13 = vrot.slane %v1240_v0, 1  ;;  %v1364_v16 = vmul.f32 %v3596_v5, %v903_v36  ;;  %v4936_v19 = vrot.slane %v3660_v9, 2  ;;  %v805_v20 = vmul.f32 %v3594_v3, %v784_v15 }
 0x253   : > { %v3664_v14 = vadd.f32 %v1133_v11, %v1059_v7  ;;  %v3669_v24 = vadd.f32 %v1135_v12, %v1060_v10  ;;  %v769_v26 = vmax.f32 %v749_v21, 0.0  ;;  %v747_v31 = vadd.f32 %v3568_v37, %v720_v22 }
 0x254   : > { %v3674_v25 = vsel %vm1000_vm3, %v4937_v8, %v1289_v13  ;;  %v1126_v32 = vrot.slane %v3640_v47, 2  ;;  %v1413_v33 = vrot.slane %v1364_v16, 2  ;;  %v833_v39 = vrot.slane %v805_v20, 7 }
 0x255   : > { %5046 = vst [vmem:[#allocation32_spill] sm:$0xff] %v3664_v14  ;;  %v750_v36 = vadd.f32 %v3568_v37, %v723_v27  ;;  %v3679_v40 = vpop.f32.mrb[12].mxu0  ;;  %v789_v41 = vmin.f32 %v769_v26, 6.0  ;;  %v767_v3 = vmax.f32 %v747_v31, 0.0  ;;  %v721_v15 = vmul.f32 %v3563_v35, %v649_v23 }
 0x256   : > { %v3683_v44 = vmul.f32 %v2367_v46, %v3563_v35  ;;  %v3685_v45 = vpop.f32.mrb[13].mxu0  ;;  %v3690_v21 = vsel %vm1125_vm4, %v4936_v19, %v1413_v33  ;;  %v834_v22 = vsel %vm831_vm2, %v832_v30, %v833_v39  ;;  %v902_v27 = vsel %vm831_vm2, %v833_v39, 0.0 }
 0x257   : > { %v770_v47 = vmax.f32 %v750_v36, 0.0  ;;  %v3694_v48 = vpop.f32.mrb[14].mxu0  ;;  %v953_v49 = vmul.f32 %v3583_v58, %v834_v22  ;;  %v954_v23 = vmul.f32 %v3583_v58, %v902_v27  ;;  %v1078_v46 = vmul.f32 %v3585_v59, %v834_v22 }
 0x258   : > { %v3700_v50 = vmul.f32 %v3563_v35, %v662_v51  ;;  %v3702_v54 = vpop.f32.mrb[15].mxu0  ;;  %v1079_v60 = vmul.f32 %v3585_v59, %v902_v27  ;;  %v841_v62 = vrot.slane %v789_v41, 7  ;;  %v3705_v30 = vmin.f32 %v767_v3, 6.0 }
 0x259   : > { %v790_v63 = vmin.f32 %v770_v47, 6.0  ;;  %v917_v0 = vmul.f32 %v3579_v53, %v834_v22  ;;  %v1002_v4 = vrot.slane %v953_v49, 1  ;;  %v1004_v7 = vrot.slane %v954_v23, 1 }
 0x25a   : > { %v1127_v10 = vrot.slane %v1078_v46, 2  ;;  %v1129_v11 = vrot.slane %v1079_v60, 2  ;;  %v3709_v12 = vsel %vm831_vm2, 0.0, %v841_v62  ;;  %v4938_v51 = vrot.slane %v3705_v30, 7 }
 0x25b   : > { %5047 = vst [vmem:[#allocation33_spill] sm:$0xff] %v3709_v12  ;;  %v3713_v13 = vadd.f32 %v3568_v37, %v721_v15  ;;  %v1003_v16 = vsel %vm1000_vm3, %v1001_v52, %v1002_v4  ;;  %v1005_v20 = vsel %vm1000_vm3, %v1002_v4, %v1004_v7  ;;  %v842_v31 = vrot.slane %v790_v63, 7 }
 0x25c   : > { %v1128_v26 = vsel %vm1125_vm4, %v1126_v32, %v1127_v10  ;;  %v1057_v33 = vadd.f32 %v1003_v16, %v3633_v43  ;;  %v1058_v39 = vadd.f32 %v1005_v20, %v917_v0  ;;  %v1130_v36 = vsel %vm1125_vm4, %v1127_v10, %v1129_v11 }
 0x25d   : > { %v961_v41 = vmul.f32 %v3583_v58, %v3709_v12  ;;  %v3722_v3 = vpop.f32.mrb[16].mxu0  ;;  %v3726_v15 = vmul.f32 %v3579_v53, %v3709_v12  ;;  %v3730_v52 = vmul.f32 %v3585_v59, %v3709_v12  ;;  %v3734_v32 = vmul.f32 %v3588_v61, %v3709_v12 }
 0x25e   : > { %v3738_v43 = vmul.f32 %v3592_v2, %v3709_v12  ;;  %v3740_v22 = vpop.f32.mrb[17].mxu0  ;;  %v3742_v27 = vadd.f32 %v1128_v26, %v1057_v33  ;;  %v1183_v47 = vadd.f32 %v1130_v36, %v1058_v39  ;;  %v3746_v49 = vmul.f32 %v3596_v5, %v3709_v12 }
 0x25f   : > { %5048 = vst [vmem:[#allocation34_spill] sm:$0xff] %v3726_v15  ;;  %5049 = vst [vmem:[#allocation35_spill] sm:$0xff] %v3730_v52  ;;  %v3751_v23 = vsel %vm831_vm2, 0.0, %v4938_v51  ;;  %v3753_v46 = vpop.f32.mrb[18].mxu0  ;;  %v1016_v60 = vrot.slane %v961_v41, 1  ;;  %v905_v39 = vsel %vm831_vm2, %v842_v31, 0.0 }
 0x260   : > { %5050 = vst [vmem:[#allocation36_spill] sm:$0xff] %v3734_v32  ;;  %5051 = vst [vmem:[#allocation37_spill] sm:$0xff] %v3738_v43  ;;  %v3759_v4 = vmul.f32 %v3583_v58, %v3751_v23  ;;  %v3761_v7 = vpop.f32.mrb[19].mxu0  ;;  %v3764_v10 = vadd.f32 %v3646_v55, %v1183_v47  ;;  %v3768_v11 = vmul.f32 %v3579_v53, %v3751_v23 }
 0x261   : > { %5052 = vst [vmem:[#allocation38_spill] sm:$0xff] %v3746_v49  ;;  %v3772_v16 = vmul.f32 %v3585_v59, %v3751_v23  ;;  %v3776_v20 = vmul.f32 %v3588_v61, %v3751_v23  ;;  %v3781_v33 = vmul.f32 %v3592_v2, %v3751_v23  ;;  %v3784_v55 = vsel %vm831_vm2, %v841_v62, %v842_v31 }
 0x262   : > { %5053 = vst [vmem:[#allocation39_spill] sm:$0xff] %v3768_v11  ;;  %5057 = vst [vmem:[#allocation43_spill] sm:$0xff] %v3784_v55  ;;  %v3790_v41 = vmul.f32 %v3596_v5, %v3751_v23  ;;  %v923_v47 = vmul.f32 %v3579_v53, %v3784_v55  ;;  %v962_v63 = vmul.f32 %v3583_v58, %v3784_v55 }
 0x263   : > { %5054 = vst [vmem:[#allocation40_spill] sm:$0xff] %v3772_v16  ;;  %5055 = vst [vmem:[#allocation41_spill] sm:$0xff] %v3776_v20  ;;  %v963_v0 = vmul.f32 %v3583_v58, %v905_v39  ;;  %v3799_v62 = vmul.f32 %v3585_v59, %v3784_v55  ;;  %v1088_v31 = vmul.f32 %v3585_v59, %v905_v39 }
 0x264   : > { %5056 = vst [vmem:[#allocation42_spill] sm:$0xff] %v3781_v33  ;;  %5058 = vst [vmem:[#allocation44_spill] sm:$0xff] %v3790_v41  ;;  %v3804_v36 = vmul.f32 %v3592_v2, %v3784_v55  ;;  %v1017_v19 = vrot.slane %v962_v63, 1  ;;  %v1246_v38 = vmul.f32 %v3592_v2, %v905_v39  ;;  %v3811_v8 = vmul.f32 %v3596_v5, %v3784_v55 }
 0x265   : > { %5059 = vst [vmem:[#allocation45_spill] sm:$0xff] %v3799_v62  ;;  %v1370_v26 = vmul.f32 %v3596_v5, %v905_v39  ;;  %v1019_v51 = vrot.slane %v963_v0, 1  ;;  %v4944_v52 = vrot.slane %v3799_v62, 2  ;;  %v1144_v15 = vrot.slane %v1088_v31, 2 }
 0x266   : > { %5060 = vst [vmem:[#allocation46_spill] sm:$0xff] %v3804_v36  ;;  %5061 = vst [vmem:[#allocation47_spill] sm:$0xff] %v3811_v8  ;;  %v3817_v49 = vsel %vm1000_vm3, %v1016_v60, %v1017_v19  ;;  %v1299_v43 = vrot.slane %v1246_v38, 1  ;;  %v4945_v63 = vrot.slane %v3811_v8, 2  ;;  %v3825_v0 = vmul.f32 %v3598_v6, %v905_v39 }
 0x267   : > { %5062 = vst [vmem:[#allocation48_spill] sm:$0xff] %v3817_v49  ;;  %v1423_v16 = vrot.slane %v1370_v26, 2  ;;  %v1020_v11 = vsel %vm1000_vm3, %v1017_v19, %v1019_v51  ;;  %v1145_v12 = vsel %vm1125_vm4, %v4944_v52, %v1144_v15  ;;  %v3828_v31 = vmul.f32 %v3806_v42, %v905_v39 }
 0x268   : > { %5063 = vst [vmem:[#allocation49_spill] sm:$0xff] %v3825_v0  ;;  %v1064_v32 = vadd.f32 %v1020_v11, %v923_v47  ;;  %v5065_v60 = vrot.slane %v3804_v36, 1  ;;  %v768_v51 = vmax.f32 %v3713_v13, 0.0  ;;  %v753_v11 = vadd.f32 %v3568_v37, %v3683_v44 }
 0x269   : > { %5064 = vst [vmem:[#allocation50_spill] sm:$0xff] %v3828_v31  ;;  %v3838_v19 = vsel %vm1125_vm4, %v4945_v63, %v1423_v16  ;;  %v727_v16 = vmul.f32 %v3651_v57, %v3563_v35  ;;  %v1207_v13 = vmul.f32 %v3588_v61, %v3784_v55  ;;  %v725_v63 = vmul.f32 %v3563_v35, %v3655_v1 }
 0x26a   : > { %v3833_v38 = vsel %vm1000_vm3, %v5065_v60, %v1299_v43  ;;  %5067 = vst [vmem:[#allocation52_spill] sm:$0xff] %v3838_v19  ;;  %v3846_v47 = vadd.f32 %v1145_v12, %v1064_v32  ;;  %v788_v43 = vmin.f32 %v768_v51, 6.0  ;;  %v751_v60 = vadd.f32 %v3568_v37, %v3700_v50 }
 0x26b   : > { %5066 = vst [vmem:[#allocation51_spill] sm:$0xff] %v3833_v38  ;;  %v773_v52 = vmax.f32 %v753_v11, 0.0  ;;  %v730_v39 = vmul.f32 %v3679_v40, %v3563_v35  ;;  %v754_v32 = vadd.f32 %v3568_v37, %v727_v16  ;;  %v728_v50 = vmul.f32 %v3563_v35, %v3685_v45 }
 0x26c   : > { %v839_v44 = vrot.slane %v788_v43, 7  ;;  %v771_v12 = vmax.f32 %v751_v60, 0.0  ;;  %v752_v57 = vadd.f32 %v3568_v37, %v725_v63  ;;  %v3869_v1 = vmul.f32 %v3694_v48, %v3563_v35 }
 0x26d   : > { %v3861_v51 = vmin.f32 %v773_v52, 6.0  ;;  %v3865_v26 = vadd.f32 %v3568_v37, %v730_v39  ;;  %v5068_v40 = vrot.slane %v3705_v30, 7  ;;  %v774_v52 = vmax.f32 %v754_v32, 0.0 }
 0x26e   : > { %v3877_v43 = vsel %vm831_vm2, %v839_v44, 0.0  ;;  %v3879_v45 = vmin.f32 %v771_v12, 6.0  ;;  %v5073_v31 = vrot.slane %v3759_v4, 1 }
 0x26f   : > { %v3874_v11 = vsel %vm831_vm2, %v5068_v40, %v839_v44  ;;  %5069 = vst [vmem:[#allocation53_spill] sm:$0xff] %v3877_v43  ;;  %v960_v48 = vmul.f32 %v3583_v58, %v3877_v43  ;;  %v1085_v60 = vmul.f32 %v3585_v59, %v3877_v43  ;;  %v1243_v12 = vmul.f32 %v3592_v2, %v3877_v43 }
 0x270   : > { %v921_v63 = vmul.f32 %v3579_v53, %v3874_v11  ;;  %v959_v39 = vmul.f32 %v3583_v58, %v3874_v11  ;;  %v3889_v30 = vmul.f32 %v3585_v59, %v3874_v11  ;;  %v1205_v16 = vmul.f32 %v3588_v61, %v3874_v11 }
 0x271   : > { %v3897_v44 = vmul.f32 %v3592_v2, %v3874_v11  ;;  %v1014_v40 = vrot.slane %v960_v48, 1  ;;  %v3904_v62 = vmul.f32 %v3596_v5, %v3874_v11  ;;  %v1139_v49 = vrot.slane %v1085_v60, 2 }
 0x272   : > { %5070 = vst [vmem:[#allocation54_spill] sm:$0xff] %v3889_v30  ;;  %v1012_v32 = vrot.slane %v959_v39, 1  ;;  %v1221_v8 = vadd.f32 %v1205_v16, %v3669_v24  ;;  %v1294_v38 = vrot.slane %v1243_v12, 1  ;;  %v1367_v48 = vmul.f32 %v3596_v5, %v3877_v43 }
 0x273   : > { %5071 = vst [vmem:[#allocation55_spill] sm:$0xff] %v3897_v44  ;;  %5072 = vst [vmem:[#allocation56_spill] sm:$0xff] %v3904_v62  ;;  %v4951_v19 = vrot.slane %v3897_v44, 1  ;;  %v5075_v60 = vrot.slane %v3889_v30, 2  ;;  %v3925_v4 = vmul.f32 %v3598_v6, %v3877_v43  ;;  %v794_v15 = vmin.f32 %v774_v52, 6.0 }
 0x274   : > { %v3911_v36 = vsel %vm1000_vm3, %v5073_v31, %v1012_v32  ;;  %v1015_v39 = vsel %vm1000_vm3, %v1012_v32, %v1014_v40  ;;  %v1418_v12 = vrot.slane %v1367_v48, 2  ;;  %v847_v32 = vrot.slane %v3861_v51, 7 }
 0x275   : > { %5074 = vst [vmem:[#allocation57_spill] sm:$0xff] %v3911_v36  ;;  %v1062_v0 = vadd.f32 %v1015_v39, %v921_v63  ;;  %v1140_v24 = vsel %vm1125_vm4, %v5075_v60, %v1139_v49  ;;  %v1295_v16 = vsel %vm1000_vm3, %v4951_v19, %v1294_v38  ;;  %5076 = vst [vmem:[#allocation58_spill] sm:$0xff] %v3925_v4  ;;  %v4952_v40 = vrot.slane %v3879_v45, 7 }
 0x276   : > { %v3927_v31 = vadd.f32 %v1295_v16, %v1221_v8  ;;  %v3933_v49 = vadd.f32 %v3568_v37, %v728_v50  ;;  %v5078_v38 = vrot.slane %v3904_v62, 2  ;;  %v3941_v8 = vsel %vm831_vm2, 0.0, %v847_v32 }
 0x277   : > { %v1187_v63 = vadd.f32 %v1140_v24, %v1062_v0  ;;  %5080 = vst [vmem:[#allocation61_spill] sm:$0xff] %v3941_v8  ;;  %v3946_v51 = vsel %vm831_vm2, 0.0, %v4952_v40  ;;  %v772_v0 = vmax.f32 %v752_v57, 0.0  ;;  %v967_v50 = vmul.f32 %v3583_v58, %v3941_v8 }
 0x278   : > { %5077 = vst [vmem:[#allocation59_spill] sm:$0xff] %v3927_v31  ;;  %v3938_v60 = vsel %vm1125_vm4, %v5078_v38, %v1418_v12  ;;  %5081 = vst [vmem:[#allocation62_spill] sm:$0xff] %v3946_v51  ;;  %v3954_v52 = vmul.f32 %v3585_v59, %v3941_v8  ;;  %v777_v24 = vmax.f32 %v3865_v26, 0.0  ;;  %v3959_v16 = vmul.f32 %v3579_v53, %v3941_v8 }
 0x279   : > { %5079 = vst [vmem:[#allocation60_spill] sm:$0xff] %v3938_v60  ;;  %v3948_v48 = vadd.f32 %v1207_v13, %v1187_v63  ;;  %v3963_v12 = vmul.f32 %v3588_v61, %v3941_v8  ;;  %v3967_v13 = vmul.f32 %v3592_v2, %v3941_v8  ;;  %v3971_v57 = vmul.f32 %v3596_v5, %v3941_v8 }
 0x27a   : > { %5083 = vst [vmem:[#allocation64_spill] sm:$0xff] %v3954_v52  ;;  %5084 = vst [vmem:[#allocation65_spill] sm:$0xff] %v3959_v16  ;;  %v1026_v63 = vrot.slane %v967_v50, 1  ;;  %v3975_v26 = vmul.f32 %v3579_v53, %v3946_v51  ;;  %v3979_v38 = vmul.f32 %v3583_v58, %v3946_v51  ;;  %v3983_v19 = vmul.f32 %v3585_v59, %v3946_v51 }
 0x27b   : > { %5082 = vst [vmem:[#allocation63_spill] sm:$0xff] %v3948_v48  ;;  %5085 = vst [vmem:[#allocation66_spill] sm:$0xff] %v3963_v12  ;;  %v3989_v16 = vmul.f32 %v3588_v61, %v3946_v51  ;;  %v3993_v50 = vmul.f32 %v3592_v2, %v3946_v51  ;;  %v3998_v12 = vmul.f32 %v3596_v5, %v3946_v51  ;;  %v792_v8 = vmin.f32 %v772_v0, 6.0 }
 0x27c   : > { %5086 = vst [vmem:[#allocation67_spill] sm:$0xff] %v3967_v13  ;;  %5087 = vst [vmem:[#allocation68_spill] sm:$0xff] %v3971_v57  ;;  %v1021_v57 = vrot.slane %v3979_v38, 1  ;;  %v4002_v52 = vmin.f32 %v777_v24, 6.0  ;;  %v4011_v51 = vadd.f32 %v3568_v37, %v3869_v1 }
 0x27d   : > { %5088 = vst [vmem:[#allocation69_spill] sm:$0xff] %v3975_v26  ;;  %5089 = vst [vmem:[#allocation70_spill] sm:$0xff] %v3983_v19  ;;  %v848_v26 = vrot.slane %v794_v15, 7  ;;  %v845_v38 = vrot.slane %v792_v8, 7 }
 0x27e   : > { %5090 = vst [vmem:[#allocation71_spill] sm:$0xff] %v3989_v16  ;;  %5091 = vst [vmem:[#allocation72_spill] sm:$0xff] %v3993_v50 }
 0x27f   : > { %5092 = vst [vmem:[#allocation73_spill] sm:$0xff] %v3998_v12  ;;  %v4006_v16 = vsel %vm831_vm2, %v847_v32, %v848_v26  ;;  %v907_v48 = vsel %vm831_vm2, %v848_v26, 0.0 }
 0x280   : > { %5093 = vst [vmem:[#allocation74_spill] sm:$0xff] %v4006_v16  ;;  %v927_v15 = vmul.f32 %v3579_v53, %v4006_v16  ;;  %v968_v0 = vmul.f32 %v3583_v58, %v4006_v16  ;;  %v969_v24 = vmul.f32 %v3583_v58, %v907_v48  ;;  %v4020_v39 = vmul.f32 %v3585_v59, %v4006_v16 }
 0x281   : > { %v1094_v32 = vmul.f32 %v3585_v59, %v907_v48  ;;  %v4025_v8 = vmul.f32 %v3592_v2, %v4006_v16  ;;  %v1252_v1 = vmul.f32 %v3592_v2, %v907_v48  ;;  %v4030_v26 = vmul.f32 %v3596_v5, %v4006_v16 }
 0x282   : > { %5094 = vst [vmem:[#allocation75_spill] sm:$0xff] %v4020_v39  ;;  %v1027_v40 = vrot.slane %v968_v0, 1  ;;  %v1029_v13 = vrot.slane %v969_v24, 1  ;;  %v4965_v19 = vrot.slane %v4020_v39, 2  ;;  %v1376_v12 = vmul.f32 %v3596_v5, %v907_v48 }
 0x283   : > { %5095 = vst [vmem:[#allocation76_spill] sm:$0xff] %v4025_v8  ;;  %5096 = vst [vmem:[#allocation77_spill] sm:$0xff] %v4030_v26  ;;  %v1154_v50 = vrot.slane %v1094_v32, 2  ;;  %v4967_v30 = vrot.slane %v4025_v8, 1  ;;  %v1309_v36 = vrot.slane %v1252_v1, 1  ;;  %v4966_v55 = vrot.slane %v4030_v26, 2 }
 0x284   : > { %v4037_v62 = vsel %vm1000_vm3, %v1026_v63, %v1027_v40  ;;  %v1030_v60 = vsel %vm1000_vm3, %v1027_v40, %v1029_v13  ;;  %v1433_v31 = vrot.slane %v1376_v12, 2  ;;  %v4041_v41 = vmul.f32 %v3598_v6, %v907_v48 }
 0x285   : > { %5097 = vst [vmem:[#allocation78_spill] sm:$0xff] %v4037_v62  ;;  %v1068_v0 = vadd.f32 %v1030_v60, %v927_v15  ;;  %v1155_v24 = vsel %vm1125_vm4, %v4965_v19, %v1154_v50  ;;  %v4049_v32 = vsel %vm1000_vm3, %v4967_v30, %v1309_v36  ;;  %v4052_v1 = vmul.f32 %v3806_v42, %v907_v48 }
 0x286   : > { %5098 = vst [vmem:[#allocation79_spill] sm:$0xff] %v4041_v41  ;;  %5099 = vst [vmem:[#allocation80_spill] sm:$0xff] %v4049_v32  ;;  %v4057_v40 = vsel %vm1125_vm4, %v4966_v55, %v1433_v31  ;;  %v5102_v12 = vrot.slane %v3879_v45, 7  ;;  %v906_v13 = vsel %vm831_vm2, %v845_v38, 0.0  ;;  %v729_v63 = vmul.f32 %v3563_v35, %v3702_v54 }
 0x287   : > { %5100 = vst [vmem:[#allocation81_spill] sm:$0xff] %v4052_v1  ;;  %5101 = vst [vmem:[#allocation82_spill] sm:$0xff] %v4057_v40  ;;  %v4067_v36 = vadd.f32 %v1155_v24, %v1068_v0  ;;  %v966_v15 = vmul.f32 %v3583_v58, %v906_v13  ;;  %v1249_v19 = vmul.f32 %v3592_v2, %v906_v13 }
 0x288   : > { %v4062_v60 = vsel %vm831_vm2, %v5102_v12, %v845_v38  ;;  %v1091_v38 = vmul.f32 %v3585_v59, %v906_v13  ;;  %v4111_v32 = vmul.f32 %v3806_v42, %v906_v13 }
 0x289   : > { %5103 = vst [vmem:[#allocation83_spill] sm:$0xff] %v4062_v60  ;;  %v965_v31 = vmul.f32 %v3583_v58, %v4062_v60  ;;  %v4076_v45 = vmul.f32 %v3585_v59, %v4062_v60  ;;  %v1209_v54 = vmul.f32 %v3588_v61, %v4062_v60  ;;  %v925_v0 = vmul.f32 %v3579_v53, %v4062_v60 }
 0x28a   : > { %v4085_v12 = vmul.f32 %v3592_v2, %v4062_v60  ;;  %v1024_v55 = vrot.slane %v966_v15, 1  ;;  %v1149_v50 = vrot.slane %v1091_v38, 2  ;;  %v1304_v40 = vrot.slane %v1249_v19, 1  ;;  %5109 = vst [vmem:[#allocation89_spill] sm:$0xff] %v4111_v32 }
 0x28b   : > { %5104 = vst [vmem:[#allocation84_spill] sm:$0xff] %v4076_v45  ;;  %v1022_v24 = vrot.slane %v965_v31, 1  ;;  %v4970_v30 = vrot.slane %v4076_v45, 2  ;;  %v1225_v48 = vadd.f32 %v1209_v54, %v3846_v47  ;;  %v4096_v31 = vmul.f32 %v3596_v5, %v4062_v60 }
 0x28c   : > { %5105 = vst [vmem:[#allocation85_spill] sm:$0xff] %v4085_v12  ;;  %v4973_v62 = vrot.slane %v4085_v12, 1  ;;  %v1373_v38 = vmul.f32 %v3596_v5, %v906_v13  ;;  %v4104_v47 = vmul.f32 %v3598_v6, %v906_v13 }
 0x28d   : > { %v4091_v39 = vsel %vm1000_vm3, %v1021_v57, %v1022_v24  ;;  %5107 = vst [vmem:[#allocation87_spill] sm:$0xff] %v4096_v31  ;;  %v1025_v26 = vsel %vm1000_vm3, %v1022_v24, %v1024_v55  ;;  %v1150_v15 = vsel %vm1125_vm4, %v4970_v30, %v1149_v50  ;;  %v4974_v54 = vrot.slane %v4096_v31, 2 }
 0x28e   : > { %5106 = vst [vmem:[#allocation86_spill] sm:$0xff] %v4091_v39  ;;  %5108 = vst [vmem:[#allocation88_spill] sm:$0xff] %v4104_v47  ;;  %v1066_v57 = vadd.f32 %v1025_v26, %v925_v0  ;;  %v1305_v19 = vsel %vm1000_vm3, %v4973_v62, %v1304_v40  ;;  %v1211_v55 = vmul.f32 %v3588_v61, %v4006_v16  ;;  %v1428_v50 = vrot.slane %v1373_v38, 2 }
 0x28f   : > { %v4115_v24 = vadd.f32 %v1305_v19, %v1225_v48  ;;  %v853_v30 = vrot.slane %v4002_v52, 7  ;;  %v5111_v0 = vmax.f32 %v3933_v49, 0.0  ;;  %v778_v40 = vmax.f32 %v4011_v51, 0.0 }
 0x290   : > { %v1191_v8 = vadd.f32 %v1150_v15, %v1066_v57  ;;  %v4125_v13 = vsel %vm1125_vm4, %v4974_v54, %v1428_v50  ;;  %v756_v48 = vadd.f32 %v3568_v37, %v729_v63  ;;  %v734_v52 = vmul.f32 %v3722_v3, %v3563_v35 }
 0x291   : > { %5110 = vst [vmem:[#allocation90_spill] sm:$0xff] %v4115_v24  ;;  %v795_v1 = vmin.f32 %v5111_v0, 6.0  ;;  %5112 = vst [vmem:[#allocation91_spill] sm:$0xff] %v4125_v13  ;;  %v4128_v62 = vsel %vm831_vm2, 0.0, %v853_v30  ;;  %v798_v19 = vmin.f32 %v778_v40, 6.0 }
 0x292   : > { %v4133_v15 = vadd.f32 %v1211_v55, %v1191_v8  ;;  %v4138_v51 = vmul.f32 %v3583_v58, %v4128_v62  ;;  %v4142_v57 = vmul.f32 %v3592_v2, %v4128_v62  ;;  %v776_v50 = vmax.f32 %v756_v48, 0.0 }
 0x293   : > { %v850_v38 = vrot.slane %v795_v1, 7  ;;  %v4145_v63 = vadd.f32 %v3568_v37, %v734_v52  ;;  %v732_v8 = vmul.f32 %v3563_v35, %v3740_v22  ;;  %v4154_v55 = vmul.f32 %v3579_v53, %v4128_v62 }
 0x294   : > { %5113 = vst [vmem:[#allocation92_spill] sm:$0xff] %v4133_v15  ;;  %v4171_v22 = vmul.f32 %v3585_v59, %v4128_v62  ;;  %v854_v49 = vrot.slane %v798_v19, 7  ;;  %v796_v26 = vmin.f32 %v776_v50, 6.0 }
 0x295   : > { %v4148_v3 = vsel %vm831_vm2, 0.0, %v850_v38  ;;  %v781_v41 = vmax.f32 %v4145_v63, 0.0  ;;  %v4193_v16 = vadd.f32 %v3568_v37, %v732_v8 }
 0x296   : > { %5114 = vst [vmem:[#allocation93_spill] sm:$0xff] %v4148_v3  ;;  %v4159_v0 = vmul.f32 %v3579_v53, %v4148_v3  ;;  %v4163_v40 = vmul.f32 %v3583_v58, %v4148_v3  ;;  %v4167_v48 = vmul.f32 %v3585_v59, %v4148_v3  ;;  %v4175_v52 = vmul.f32 %v3588_v61, %v4148_v3 }
 0x297   : > { %v4179_v54 = vmul.f32 %v3592_v2, %v4148_v3  ;;  %v4185_v45 = vmul.f32 %v3596_v5, %v4148_v3  ;;  %v4189_v39 = vsel %vm831_vm2, %v853_v30, %v854_v49  ;;  %v851_v31 = vrot.slane %v796_v26, 7 }
 0x298   : > { %5115 = vst [vmem:[#allocation94_spill] sm:$0xff] %v4175_v52  ;;  %5118 = vst [vmem:[#allocation97_spill] sm:$0xff] %v4189_v39  ;;  %v909_v52 = vsel %vm831_vm2, %v854_v49, 0.0  ;;  %v931_v19 = vmul.f32 %v3579_v53, %v4189_v39  ;;  %v4199_v50 = vmul.f32 %v3583_v58, %v4189_v39  ;;  %v4204_v63 = vmul.f32 %v3585_v59, %v4189_v39 }
 0x299   : > { %5116 = vst [vmem:[#allocation95_spill] sm:$0xff] %v4179_v54  ;;  %5117 = vst [vmem:[#allocation96_spill] sm:$0xff] %v4185_v45  ;;  %v975_v15 = vmul.f32 %v3583_v58, %v909_v52  ;;  %v1100_v30 = vmul.f32 %v3585_v59, %v909_v52  ;;  %v4209_v26 = vmul.f32 %v3592_v2, %v4189_v39 }
 0x29a   : > { %v1258_v49 = vmul.f32 %v3592_v2, %v909_v52  ;;  %v4214_v8 = vmul.f32 %v3596_v5, %v4189_v39  ;;  %v1037_v1 = vrot.slane %v4199_v50, 1  ;;  %v4991_v3 = vrot.slane %v4204_v63, 2 }
 0x29b   : > { %v1039_v45 = vrot.slane %v975_v15, 1  ;;  %v1382_v13 = vmul.f32 %v3596_v5, %v909_v52  ;;  %v1164_v24 = vrot.slane %v1100_v30, 2  ;;  %v4990_v12 = vrot.slane %v4209_v26, 1 }
 0x29c   : > { %v1319_v32 = vrot.slane %v1258_v49, 1  ;;  %v4989_v47 = vrot.slane %v4214_v8, 2  ;;  %v4223_v44 = vmul.f32 %v3598_v6, %v909_v52  ;;  %v4226_v20 = vmul.f32 %v3806_v42, %v909_v52 }
 0x29d   : > { %v1040_v60 = vsel %vm1000_vm3, %v1037_v1, %v1039_v45  ;;  %v1443_v33 = vrot.slane %v1382_v13, 2  ;;  %v4233_v50 = vsel %vm1125_vm4, %v4991_v3, %v1164_v24  ;;  %v4241_v45 = vsel %vm831_vm2, %v850_v38, %v851_v31 }
 0x29e   : > { %5119 = vst [vmem:[#allocation98_spill] sm:$0xff] %v4223_v44  ;;  %5120 = vst [vmem:[#allocation99_spill] sm:$0xff] %v4226_v20  ;;  %v4228_v15 = vadd.f32 %v1040_v60, %v931_v19  ;;  %v4238_v30 = vsel %vm1000_vm3, %v4990_v12, %v1319_v32  ;;  %v908_v24 = vsel %vm831_vm2, %v851_v31, 0.0  ;;  %v971_v32 = vmul.f32 %v3583_v58, %v4241_v45 }
 0x29f   : > { %5121 = vst [vmem:[#allocation100_spill] sm:$0xff] %v4241_v45  ;;  %v4247_v60 = vsel %vm1125_vm4, %v4989_v47, %v1443_v33  ;;  %v972_v49 = vmul.f32 %v3583_v58, %v908_v24  ;;  %v1096_v38 = vmul.f32 %v3585_v59, %v4241_v45  ;;  %v929_v13 = vmul.f32 %v3579_v53, %v4241_v45 }
 0x2a0   : > { %v1097_v33 = vmul.f32 %v3585_v59, %v908_v24  ;;  %v1213_v52 = vmul.f32 %v3588_v61, %v4241_v45  ;;  %v4264_v31 = vmul.f32 %v3592_v2, %v4241_v45  ;;  %v1032_v19 = vrot.slane %v971_v32, 1 }
 0x2a1   : > { %v1034_v47 = vrot.slane %v972_v49, 1  ;;  %v1157_v12 = vrot.slane %v1096_v38, 2  ;;  %v1255_v58 = vmul.f32 %v3592_v2, %v908_v24  ;;  %v4271_v53 = vmul.f32 %v3596_v5, %v4241_v45 }
 0x2a2   : > { %v1159_v3 = vrot.slane %v1097_v33, 2  ;;  %v1229_v20 = vadd.f32 %v1213_v52, %v4067_v36  ;;  %v1312_v44 = vrot.slane %v4264_v31, 1  ;;  %v1379_v14 = vmul.f32 %v3596_v5, %v908_v24 }
 0x2a3   : > { %v1035_v59 = vsel %vm1000_vm3, %v1032_v19, %v1034_v47  ;;  %v1314_v54 = vrot.slane %v1255_v58, 1  ;;  %v4276_v32 = vmul.f32 %v3598_v6, %v908_v24  ;;  %v1215_v36 = vmul.f32 %v3588_v61, %v4189_v39 }
 0x2a4   : > { %v1070_v49 = vadd.f32 %v1035_v59, %v929_v13  ;;  %v1160_v38 = vsel %vm1125_vm4, %v1157_v12, %v1159_v3  ;;  %v5006_v52 = vrot.slane %v4271_v53, 2  ;;  %v1438_v45 = vrot.slane %v1379_v14, 2 }
 0x2a5   : > { %v1315_v33 = vsel %vm1000_vm3, %v1312_v44, %v1314_v54  ;;  %v4286_v47 = vmul.f32 %v3806_v42, %v908_v24  ;;  %v801_v58 = vmin.f32 %v781_v41, 6.0  ;;  %v1593_v13 = vrot.slane %v4276_v32, 1 }
 0x2a6   : > { %v1195_v43 = vadd.f32 %v1160_v38, %v1070_v49  ;;  %v4288_v4 = vadd.f32 %v1315_v33, %v1229_v20  ;;  %v779_v3 = vmax.f32 %v4193_v16, 0.0  ;;  %v4295_v59 = vsel %vm1125_vm4, %v5006_v52, %v1438_v45 }
 0x2a7   : > { %v4298_v39 = vmul.f32 %v3604_v17, %v801_v58  ;;  %v5122_v14 = vrot.slane %v4163_v40, 1  ;;  %v5123_v41 = vrot.slane %v4138_v51, 1  ;;  %v1717_v45 = vrot.slane %v4286_v47, 2 }
 0x2a8   : > { %v1231_v24 = vadd.f32 %v1215_v36, %v1195_v43  ;;  %v4306_v49 = vmin.f32 %v779_v3, 6.0  ;;  %v5124_v58 = vrot.slane %v4167_v48, 2  ;;  %v1214_v43 = vmul.f32 %v3588_v61, %v4128_v62 }
 0x2a9   : > { %v1033_v54 = vsel %vm1000_vm3, %v5122_v14, %v1032_v19  ;;  %v1038_v20 = vsel %vm1000_vm3, %v5123_v41, %v1037_v1  ;;  %v859_v33 = vrot.slane %v4298_v39, 7  ;;  %v1161_v19 = vrot.slane %v4171_v22, 2 }
 0x2aa   : > { %v1069_v16 = vadd.f32 %v1033_v54, %v4159_v0  ;;  %v1071_v38 = vadd.f32 %v1038_v20, %v4154_v55  ;;  %v1158_v40 = vsel %vm1125_vm4, %v5124_v58, %v1157_v12  ;;  %v856_v51 = vrot.slane %v4306_v49, 7 }
 0x2ab   : > { %v1316_v0 = vrot.slane %v4142_v57, 1  ;;  %v901_v55 = vsel %vm831_vm2, 0.0, %v859_v33  ;;  %v5125_v36 = vrot.slane %v4204_v63, 2  ;;  %v1380_v12 = vmul.f32 %v3596_v5, %v4128_v62 }
 0x2ac   : > { %v1194_v1 = vadd.f32 %v1158_v40, %v1069_v16  ;;  %v735_v22 = vmul.f32 %v3753_v46, %v3563_v35  ;;  %v4331_v3 = vmul.f32 %v3598_v6, %v901_v55  ;;  %v4334_v14 = vmul.f32 %v3806_v42, %v901_v55 }
 0x2ad   : > { %v1163_v48 = vsel %vm1125_vm4, %v1161_v19, %v5125_v36  ;;  %v900_v57 = vsel %vm831_vm2, 0.0, %v856_v51  ;;  %v733_v54 = vmul.f32 %v3563_v35, %v3761_v7  ;;  %v4344_v46 = vmul.f32 %v3606_v18, %v901_v55 }
 0x2ae   : > { %v1196_v63 = vadd.f32 %v1163_v48, %v1071_v38  ;;  %v1216_v41 = vmul.f32 %v3588_v61, %v900_v57  ;;  %v1230_v20 = vadd.f32 %v1214_v43, %v1194_v1  ;;  %v4341_v49 = vmul.f32 %v3592_v2, %v900_v57 }
 0x2af   : > { %v5126_v58 = vrot.slane %v4209_v26, 1  ;;  %v4351_v19 = vmul.f32 %v3596_v5, %v900_v57  ;;  %v1440_v1 = vrot.slane %v1380_v12, 2  ;;  %v1498_v36 = vmul.f32 %v3606_v18, %v900_v57 }
 0x2b0   : > { %v4354_v7 = vadd.f32 %v1216_v41, %v1196_v63  ;;  %v1321_v43 = vrot.slane %v4341_v49, 1  ;;  %v4360_v48 = vmul.f32 %v3598_v6, %v900_v57  ;;  %v5127_v26 = vrot.slane %v4214_v8, 2 }
 0x2b1   : > { %v1318_v40 = vsel %vm1000_vm3, %v1316_v0, %v5126_v58  ;;  %v762_v58 = vadd.f32 %v3568_v37, %v735_v22  ;;  %v760_v63 = vadd.f32 %v3568_v37, %v733_v54  ;;  %v1197_v12 = vadd.f32 %v4233_v50, %v4228_v15 }
 0x2b2   : > { %v1354_v38 = vadd.f32 %v1318_v40, %v1230_v20  ;;  %v1442_v0 = vsel %vm1125_vm4, %v1440_v1, %v5127_v26  ;;  %v4371_v49 = vmul.f32 %v3806_v42, %v900_v57  ;;  %v1355_v40 = vadd.f32 %v4238_v30, %v1231_v24  ;;  %v5163_v20 = vld [vmem:[#allocation51_spill] sm:$0xff] }
 0x2b3   : > { %v782_v35 = vmax.f32 %v762_v58, 0.0  ;;  %v780_v16 = vmax.f32 %v760_v63, 0.0  ;;  %v1218_v8 = vadd.f32 %v3624_v34, %v3742_v27  ;;  %v5128_v22 = vrot.slane %v3649_v56, 1 }
 0x2b4   : > { %v1478_v41 = vadd.f32 %v1442_v0, %v1354_v38  ;;  %v5129_v37 = vrot.slane %v3616_v28, 1  ;;  %v1479_v50 = vadd.f32 %v4247_v60, %v1355_v40  ;;  %v1343_v57 = vadd.f32 %v3674_v25, %v3764_v10 }
 0x2b5   : > { %v5130_v30 = vrot.slane %v3660_v9, 2  ;;  %v5131_v24 = vrot.slane %v3619_v29, 2  ;;  %v802_v34 = vmin.f32 %v782_v35, 6.0  ;;  %v800_v27 = vmin.f32 %v780_v16, 6.0 }
 0x2b6   : > { %v1288_v54 = vsel %vm1000_vm3, %v5129_v37, %v5128_v22  ;;  %v4381_v15 = vadd.f32 %v1498_v36, %v1478_v41  ;;  %v1486_v28 = vmul.f32 %v3606_v18, %v3751_v23  ;;  %v1467_v1 = vadd.f32 %v3690_v21, %v1343_v57 }
 0x2b7   : > { %v1412_v38 = vsel %vm1125_vm4, %v5131_v24, %v5130_v30  ;;  %v1342_v56 = vadd.f32 %v1288_v54, %v1218_v8  ;;  %v1487_v60 = vmul.f32 %v3606_v18, %v3874_v11  ;;  %v1522_v25 = vmul.f32 %v3598_v6, %v3751_v23 }
 0x2b8   : > { %v1523_v9 = vmul.f32 %v3598_v6, %v3874_v11  ;;  %v808_v29 = vmul.f32 %v3604_v17, %v802_v34  ;;  %v857_v10 = vrot.slane %v800_v27, 7  ;;  %v4403_v16 = vmul.f32 %v3806_v42, %v3751_v23 }
 0x2b9   : > { %v1466_v35 = vadd.f32 %v1412_v38, %v1342_v56  ;;  %v1503_v36 = vadd.f32 %v1487_v60, %v1467_v1  ;;  %v1570_v26 = vrot.slane %v1522_v25, 1  ;;  %v4407_v0 = vmul.f32 %v3806_v42, %v3874_v11 }
 0x2ba   : > { %v1571_v21 = vrot.slane %v1523_v9, 1  ;;  %v860_v58 = vrot.slane %v808_v29, 7  ;;  %v858_v63 = vsel %vm831_vm2, %v856_v51, %v857_v10  ;;  %v910_v41 = vsel %vm831_vm2, %v857_v10, 0.0 }
 0x2bb   : > { %v1502_v40 = vadd.f32 %v1486_v28, %v1466_v35  ;;  %v1217_v17 = vmul.f32 %v3588_v61, %v858_v63  ;;  %v1260_v8 = vmul.f32 %v3592_v2, %v858_v63  ;;  %v1261_v23 = vmul.f32 %v3592_v2, %v910_v41 }
 0x2bc   : > { %v4415_v22 = vmul.f32 %v3596_v5, %v858_v63  ;;  %v861_v11 = vsel %vm831_vm2, %v859_v33, %v860_v58  ;;  %v911_v37 = vsel %vm831_vm2, %v860_v58, 0.0  ;;  %v1385_v51 = vmul.f32 %v3596_v5, %v910_v41 }
 0x2bd   : > { %v1499_v54 = vmul.f32 %v3606_v18, %v858_v63  ;;  %v1501_v57 = vmul.f32 %v3606_v18, %v861_v11  ;;  %v4425_v61 = vmul.f32 %v3598_v6, %v861_v11  ;;  %v1545_v2 = vmul.f32 %v3598_v6, %v911_v37 }
 0x2be   : > { %v4429_v30 = vmul.f32 %v3806_v42, %v861_v11  ;;  %v1669_v39 = vmul.f32 %v3806_v42, %v911_v37  ;;  %v1233_v24 = vadd.f32 %v1217_v17, %v1197_v12  ;;  %v1322_v33 = vrot.slane %v1260_v8, 1 }
 0x2bf   : > { %v1324_v38 = vrot.slane %v1261_v23, 1  ;;  %v5002_v34 = vrot.slane %v4425_v61, 1  ;;  %v1608_v5 = vrot.slane %v1545_v2, 1  ;;  %v5003_v56 = vrot.slane %v4415_v22, 2 }
 0x2c0   : > { %v5001_v27 = vrot.slane %v4429_v30, 2  ;;  %v1732_v28 = vrot.slane %v1669_v39, 2  ;;  %v4436_v1 = vsel %vm1000_vm3, %v1321_v43, %v1322_v33  ;;  %v1448_v25 = vrot.slane %v1385_v51, 2 }
 0x2c1   : > { %v1325_v60 = vsel %vm1000_vm3, %v1322_v33, %v1324_v38  ;;  %v4442_v12 = vsel %vm1000_vm3, %v5002_v34, %v1608_v5  ;;  %v1515_v29 = vadd.f32 %v1499_v54, %v1479_v50  ;;  %v4445_v10 = vmul.f32 %v3598_v6, %v858_v63  ;;  %v5132_v54 = vld [vmem:[#allocation58_spill] sm:$0xff]  ;;  %v5134_v5 = vld [vmem:[#allocation53_spill] sm:$0xff] }
 0x2c2   : > { %v1357_v9 = vadd.f32 %v1325_v60, %v1233_v24  ;;  %v4450_v35 = vsel %vm1125_vm4, %v5001_v27, %v1732_v28  ;;  %v1449_v43 = vsel %vm1125_vm4, %v5003_v56, %v1448_v25  ;;  %v1542_v58 = vmul.f32 %v3598_v6, %v910_v41  ;;  %v4499_v27 = vld [vmem:[#allocation13] ss:$0 sm:$0xff]  ;;  %v5150_v56 = vld [vmem:[#allocation54_spill] sm:$0xff]  ;;  %v5152_v60 = vld [vmem:[#allocation40_spill] sm:$0xff] }
 0x2c3   : > { %v4457_v17 = vmul.f32 %v3806_v42, %v858_v63  ;;  %v5005_v50 = vrot.slane %v4445_v10, 1  ;;  %v1666_v23 = vmul.f32 %v3806_v42, %v910_v41  ;;  %v1572_v11 = vsel %vm1000_vm3, %v1570_v26, %v1571_v21 }
 0x2c4   : > { %v1481_v8 = vadd.f32 %v1449_v43, %v1357_v9  ;;  %v1603_v37 = vrot.slane %v1542_v58, 1  ;;  %v5133_v2 = vrot.slane %v5132_v54, 1  ;;  %v1626_v24 = vadd.f32 %v1572_v11, %v1502_v40  ;;  %v5135_v40 = vld [vmem:[#allocation32_spill] sm:$0xff] }
 0x2c5   : > { %v5004_v51 = vrot.slane %v4457_v17, 2  ;;  %v1727_v38 = vrot.slane %v1666_v23, 2  ;;  %v1648_v28 = vmul.f32 %v3806_v42, %v5134_v5  ;;  %v1694_v41 = vrot.slane %v4403_v16, 2  ;;  %v5137_v23 = vld [vmem:[#allocation55_spill] sm:$0xff]  ;;  %v5139_v16 = vld [vmem:[#allocation42_spill] sm:$0xff] }
 0x2c6   : > { %v1574_v39 = vsel %vm1000_vm3, %v1571_v21, %v5133_v2  ;;  %v4466_v33 = vadd.f32 %v1501_v57, %v1481_v8  ;;  %v1604_v26 = vsel %vm1000_vm3, %v5005_v50, %v1603_v37  ;;  %v1695_v25 = vrot.slane %v4407_v0, 2  ;;  %v5136_v57 = vld [vmem:[#allocation41_spill] sm:$0xff]  ;;  %v5142_v2 = vld [vmem:[#allocation59_spill] sm:$0xff] }
 0x2c7   : > { %v1627_v63 = vadd.f32 %v1574_v39, %v1503_v36  ;;  %v4476_v9 = vadd.f32 %v1604_v26, %v1515_v29  ;;  %v4481_v21 = vsel %vm1125_vm4, %v5004_v51, %v1727_v38  ;;  %v1697_v36 = vrot.slane %v1648_v28, 2  ;;  %v4486_v8 = vld [vmem:[#allocation11] ss:$0 sm:$0xff]  ;;  %v5141_v29 = vld [vmem:[#allocation44_spill] sm:$0xff] }
 0x2c8   : > { %v1220_v43 = vadd.f32 %v5136_v57, %v5135_v40  ;;  %v1696_v58 = vsel %vm1125_vm4, %v1694_v41, %v1695_v25  ;;  %v5138_v11 = vrot.slane %v5137_v23, 1  ;;  %v5140_v37 = vrot.slane %v5139_v16, 1  ;;  %v5143_v39 = vld [vmem:[#allocation60_spill] sm:$0xff]  ;;  %v5144_v40 = vld [vmem:[#allocation33_spill] sm:$0xff] }
 0x2c9   : > { %v1415_v54 = vrot.slane %v5141_v29, 2  ;;  %v1469_v38 = vadd.f32 %v5143_v39, %v5142_v2  ;;  %v1698_v5 = vsel %vm1125_vm4, %v1695_v25, %v1697_v36  ;;  %v1750_v28 = vadd.f32 %v1696_v58, %v1626_v24  ;;  %v5145_v23 = vld [vmem:[#allocation56_spill] sm:$0xff] }
 0x2ca   : > { %v1293_v0 = vsel %vm1000_vm3, %v5140_v37, %v5138_v11  ;;  %v1488_v41 = vmul.f32 %v3606_v18, %v5144_v40  ;;  %v1751_v57 = vadd.f32 %v1698_v5, %v1627_v63  ;;  %v5146_v34 = vrot.slane %v5145_v23, 2  ;;  %v5147_v11 = vld [vmem:[#allocation43_spill] sm:$0xff] }
 0x2cb   : > { %v1344_v26 = vadd.f32 %v1293_v0, %v1220_v43  ;;  %v1489_v37 = vmul.f32 %v3606_v18, %v5147_v11  ;;  %v1525_v29 = vmul.f32 %v3598_v6, %v5144_v40  ;;  %v1773_v25 = vmul.f32 %v4486_v8, %v1750_v28  ;;  %v5148_v23 = vld [vmem:[#allocation39_spill] sm:$0xff] }
 0x2cc   : > { %v1417_v16 = vsel %vm1125_vm4, %v1415_v54, %v5146_v34  ;;  %v1526_v36 = vmul.f32 %v3598_v6, %v5147_v11  ;;  %v1649_v63 = vmul.f32 %v3806_v42, %v5144_v40  ;;  %v1774_v43 = vmul.f32 %v4486_v8, %v1751_v57 }
 0x2cd   : > { %v1468_v24 = vadd.f32 %v1417_v16, %v1344_v26  ;;  %v1505_v58 = vadd.f32 %v1489_v37, %v1469_v38  ;;  %v1575_v34 = vrot.slane %v1525_v29, 1  ;;  %v1650_v0 = vmul.f32 %v3806_v42, %v5147_v11  ;;  %v5149_v16 = vld [vmem:[#allocation57_spill] sm:$0xff] }
 0x2ce   : > { %v1796_v54 = vadd.f32 %v4499_v27, %v1773_v25  ;;  %v1576_v39 = vrot.slane %v1526_v36, 1  ;;  %v1699_v5 = vrot.slane %v1649_v63, 2  ;;  %v1797_v28 = vadd.f32 %v4499_v27, %v1774_v43  ;;  %v5154_v29 = vld [vmem:[#allocation49_spill] sm:$0xff] }
 0x2cf   : > { %v1504_v2 = vadd.f32 %v1488_v41, %v1468_v24  ;;  %v1700_v26 = vrot.slane %v1650_v0, 2  ;;  %v1061_v55 = vadd.f32 %v5149_v16, %v5148_v23  ;;  %v5151_v40 = vrot.slane %v5150_v56, 2  ;;  %v5156_v24 = vld [vmem:[#allocation46_spill] sm:$0xff]  ;;  %v5158_v63 = vld [vmem:[#allocation37_spill] sm:$0xff] }
 0x2d0   : > { %v5153_v57 = vrot.slane %v5152_v60, 2  ;;  %v1812_v37 = vmax.f32 %v1796_v54, 0.0  ;;  %v1577_v11 = vsel %vm1000_vm3, %v1575_v34, %v1576_v39  ;;  %v5155_v25 = vrot.slane %v5154_v29, 1  ;;  %v5162_v29 = vld [vmem:[#allocation63_spill] sm:$0xff] }
 0x2d1   : > { %v5157_v36 = vrot.slane %v5156_v24, 1  ;;  %v5159_v43 = vrot.slane %v5158_v63, 1  ;;  %v1813_v23 = vmax.f32 %v1797_v28, 0.0  ;;  %v1628_v16 = vadd.f32 %v1577_v11, %v1504_v2  ;;  %v5164_v63 = vld [vmem:[#allocation38_spill] sm:$0xff]  ;;  %v5166_v2 = vld [vmem:[#allocation52_spill] sm:$0xff] }
 0x2d2   : > { %v1138_v38 = vsel %vm1125_vm4, %v5153_v57, %v5151_v40  ;;  %v1579_v41 = vsel %vm1000_vm3, %v1576_v39, %v5155_v25  ;;  %v1701_v60 = vsel %vm1125_vm4, %v1699_v5, %v1700_v26  ;;  %v1828_v51 = vmin.f32 %v1812_v37, 6.0  ;;  %v5160_v40 = vld [vmem:[#allocation50_spill] sm:$0xff]  ;;  %v5168_v37 = vld [vmem:[#allocation83_spill] sm:$0xff] }
 0x2d3   : > { %v1298_v0 = vsel %vm1000_vm3, %v5159_v43, %v5157_v36  ;;  %v1629_v56 = vadd.f32 %v1579_v41, %v1505_v58  ;;  %v5161_v54 = vrot.slane %v5160_v40, 2  ;;  %v1186_v57 = vadd.f32 %v1138_v38, %v1061_v55  ;;  %v5165_v36 = vld [vmem:[#allocation36_spill] sm:$0xff]  ;;  %v5167_v11 = vld [vmem:[#allocation62_spill] sm:$0xff]  ;;  %v5169_v38 = vld [vmem:[#allocation47_spill] sm:$0xff] }
 0x2d4   : > { %v1347_v39 = vadd.f32 %v5163_v20, %v5162_v29  ;;  %v1829_v25 = vmin.f32 %v1813_v23, 6.0  ;;  %v1752_v24 = vadd.f32 %v1701_v60, %v1628_v16  ;;  %v1420_v52 = vrot.slane %v5164_v63, 2  ;;  %v5171_v29 = vld [vmem:[#allocation34_spill] sm:$0xff] }
 0x2d5   : > { %v1703_v34 = vsel %vm1125_vm4, %v1700_v26, %v5161_v54  ;;  %v1222_v28 = vadd.f32 %v5165_v36, %v1186_v57  ;;  %v1490_v5 = vmul.f32 %v3606_v18, %v5167_v11  ;;  %v1491_v41 = vmul.f32 %v3606_v18, %v5168_v37 }
 0x2d6   : > { %v1753_v50 = vadd.f32 %v1703_v34, %v1629_v56  ;;  %v1471_v58 = vadd.f32 %v5166_v2, %v1347_v39  ;;  %v1844_v26 = vpack.c.bf16 %v1829_v25, %v1828_v51  ;;  %v1775_v55 = vmul.f32 %v4486_v8, %v1752_v24  ;;  %v5172_v39 = vld [vmem:[#allocation48_spill] sm:$0xff] }
 0x2d7   : > { %v5170_v43 = vrot.slane %v5169_v38, 2  ;;  %v1346_v16 = vadd.f32 %v1298_v0, %v1222_v28  ;;  %v1528_v60 = vmul.f32 %v3598_v6, %v5167_v11  ;;  %v1529_v40 = vmul.f32 %v3598_v6, %v5168_v37 }
 0x2d8   : > { %v1776_v20 = vmul.f32 %v4486_v8, %v1753_v50  ;;  %v1507_v56 = vadd.f32 %v1491_v41, %v1471_v58  ;;  %2381 = vmatprep.mubr.msk.bf16.mxu1 %vm1868_vm5, %v1844_v26  ;;  %v1798_v51 = vadd.f32 %v4499_v27, %v1775_v55  ;;  %v1652_v50 = vmul.f32 %v3806_v42, %v5167_v11  ;;  %v5173_v41 = vld [vmem:[#allocation88_spill] sm:$0xff]  ;;  %v5175_v55 = vld [vmem:[#allocation45_spill] sm:$0xff] }
 0x2d9   : > { %v1422_v23 = vsel %vm1125_vm4, %v1420_v52, %v5170_v43  ;;  %v1653_v52 = vmul.f32 %v3806_v42, %v5168_v37  ;;  %v1580_v34 = vrot.slane %v1528_v60, 1  ;;  %v1581_v57 = vrot.slane %v1529_v40, 1  ;;  %v5177_v37 = vld [vmem:[#allocation35_spill] sm:$0xff] }
 0x2da   : > { %v1799_v54 = vadd.f32 %v4499_v27, %v1776_v20  ;;  %v1470_v0 = vadd.f32 %v1422_v23, %v1346_v16  ;;  %v1063_v25 = vadd.f32 %v5172_v39, %v5171_v29  ;;  %v1814_v24 = vmax.f32 %v1798_v51, 0.0 }
 0x2db   : > { %v1704_v36 = vrot.slane %v1652_v50, 2  ;;  %v1705_v28 = vrot.slane %v1653_v52, 2  ;;  %v1582_v58 = vsel %vm1000_vm3, %v1580_v34, %v1581_v57  ;;  %v5174_v26 = vrot.slane %v5173_v41, 1 }
 0x2dc   : > { %v1815_v63 = vmax.f32 %v1799_v54, 0.0  ;;  %v1506_v2 = vadd.f32 %v1490_v5, %v1470_v0  ;;  %v5176_v20 = vrot.slane %v5175_v55, 2  ;;  %v5178_v38 = vrot.slane %v5177_v37, 2  ;;  %v5179_v54 = vld [vmem:[#allocation89_spill] sm:$0xff] }
 0x2dd   : > { %v1584_v11 = vsel %vm1000_vm3, %v1581_v57, %v5174_v26  ;;  %v1830_v23 = vmin.f32 %v1814_v24, 6.0  ;;  %v1706_v40 = vsel %vm1125_vm4, %v1704_v36, %v1705_v28  ;;  %v5180_v5 = vrot.slane %v5179_v54, 2  ;;  %v5181_v0 = vld [vmem:[#allocation85_spill] sm:$0xff]  ;;  %v5183_v57 = vld [vmem:[#allocation72_spill] sm:$0xff] }
 0x2de   : > { %v1143_v43 = vsel %vm1125_vm4, %v5178_v38, %v5176_v20  ;;  %v1831_v16 = vmin.f32 %v1815_v63, 6.0  ;;  %v1631_v60 = vadd.f32 %v1584_v11, %v1507_v56  ;;  %v1630_v51 = vadd.f32 %v1582_v58, %v1506_v2  ;;  %v5185_v55 = vld [vmem:[#allocation73_spill] sm:$0xff]  ;;  %v5186_v63 = vld [vmem:[#allocation90_spill] sm:$0xff]  ;;  %v5187_v56 = vld [vmem:[#allocation91_spill] sm:$0xff] }
 0x2df   : > { %v1708_v50 = vsel %vm1125_vm4, %v1705_v28, %v5180_v5  ;;  %v1188_v52 = vadd.f32 %v1143_v43, %v1063_v25  ;;  %v5182_v34 = vrot.slane %v5181_v0, 1  ;;  %v5184_v29 = vrot.slane %v5183_v57, 1  ;;  %v5188_v2 = vld [vmem:[#allocation71_spill] sm:$0xff]  ;;  %v5189_v20 = vld [vmem:[#allocation61_spill] sm:$0xff]  ;;  %v5190_v25 = vld [vmem:[#allocation74_spill] sm:$0xff] }
 0x2e0   : > { %v1845_v41 = vpack.c.bf16 %v1831_v16, %v1830_v23  ;;  %v1755_v26 = vadd.f32 %v1708_v50, %v1631_v60  ;;  %v1425_v24 = vrot.slane %v5185_v55, 2  ;;  %v1473_v11 = vadd.f32 %v5187_v56, %v5186_v63  ;;  %v5191_v43 = vld [vmem:[#allocation87_spill] sm:$0xff]  ;;  %v5193_v55 = vld [vmem:[#allocation69_spill] sm:$0xff] }
 0x2e1   : > { %v1303_v39 = vsel %vm1000_vm3, %v5184_v29, %v5182_v34  ;;  %v1754_v36 = vadd.f32 %v1706_v40, %v1630_v51  ;;  %v1224_v58 = vadd.f32 %v5188_v2, %v1188_v52  ;;  %v1492_v28 = vmul.f32 %v3606_v18, %v5189_v20 }
 0x2e2   : > { %v1493_v37 = vmul.f32 %v3606_v18, %v5190_v25  ;;  %2382 = vmatmul.mubr.msk.bf16.vlgmr.msra.gmra.mrb[0].mxu1 %vm1868_vm5, %v1845_v41  ;;  %v1778_v38 = vmul.f32 %v4486_v8, %v1755_v26  ;;  %v5192_v23 = vrot.slane %v5191_v43, 2  ;;  %v1531_v60 = vmul.f32 %v3598_v6, %v5189_v20  ;;  %v5197_v43 = vld [vmem:[#allocation84_spill] sm:$0xff] }
 0x2e3   : > { %v1532_v40 = vmul.f32 %v3598_v6, %v5190_v25  ;;  %v1777_v51 = vmul.f32 %v4486_v8, %v1754_v36  ;;  %v1348_v54 = vadd.f32 %v1303_v39, %v1224_v58  ;;  %v1655_v50 = vmul.f32 %v3806_v42, %v5189_v20 }
 0x2e4   : > { %v1427_v16 = vsel %vm1125_vm4, %v1425_v24, %v5192_v23  ;;  %v1509_v5 = vadd.f32 %v1493_v37, %v1473_v11  ;;  %v1801_v52 = vadd.f32 %v4499_v27, %v1778_v38  ;;  %v1585_v0 = vrot.slane %v1531_v60, 1  ;;  %v5194_v24 = vld [vmem:[#allocation86_spill] sm:$0xff]  ;;  %v5195_v11 = vld [vmem:[#allocation79_spill] sm:$0xff] }
 0x2e5   : > { %v1586_v34 = vrot.slane %v1532_v40, 1  ;;  %v1656_v57 = vmul.f32 %v3806_v42, %v5190_v25  ;;  %v1800_v29 = vadd.f32 %v4499_v27, %v1777_v51  ;;  %v1472_v41 = vadd.f32 %v1427_v16, %v1348_v54  ;;  %v5199_v25 = vld [vmem:[#allocation70_spill] sm:$0xff]  ;;  %v5201_v51 = vld [vmem:[#allocation81_spill] sm:$0xff] }
 0x2e6   : > { %v1709_v26 = vrot.slane %v1655_v50, 2  ;;  %v1065_v63 = vadd.f32 %v5194_v24, %v5193_v55  ;;  %v1817_v56 = vmax.f32 %v1801_v52, 0.0  ;;  %v5196_v36 = vrot.slane %v5195_v11, 1  ;;  %v5207_v24 = vld [vmem:[#allocation66_spill] sm:$0xff] }
 0x2e7   : > { %v1587_v39 = vsel %vm1000_vm3, %v1585_v0, %v1586_v34  ;;  %v1710_v58 = vrot.slane %v1656_v57, 2  ;;  %v1816_v20 = vmax.f32 %v1800_v29, 0.0  ;;  %v1508_v37 = vadd.f32 %v1492_v28, %v1472_v41  ;;  %v5203_v29 = vld [vmem:[#allocation76_spill] sm:$0xff] }
 0x2e8   : > { %v1589_v2 = vsel %vm1000_vm3, %v1586_v34, %v5196_v36  ;;  %v5198_v42 = vrot.slane %v5197_v43, 2  ;;  %v5200_v23 = vrot.slane %v5199_v25, 2  ;;  %v1833_v60 = vmin.f32 %v1817_v56, 6.0  ;;  %v5208_v36 = vld [vmem:[#allocation92_spill] sm:$0xff] }
 0x2e9   : > { %v1633_v38 = vadd.f32 %v1589_v2, %v1509_v5  ;;  %v1711_v40 = vsel %vm1125_vm4, %v1709_v26, %v1710_v58  ;;  %v5202_v54 = vrot.slane %v5201_v51, 2  ;;  %v1832_v0 = vmin.f32 %v1816_v20, 6.0  ;;  %v5205_v5 = vld [vmem:[#allocation67_spill] sm:$0xff]  ;;  %v5209_v56 = vld [vmem:[#allocation80_spill] sm:$0xff] }
 0x2ea   : > { %v1148_v16 = vsel %vm1125_vm4, %v5200_v23, %v5198_v42  ;;  %v1632_v34 = vadd.f32 %v1587_v39, %v1508_v37  ;;  %v5204_v28 = vrot.slane %v5203_v29, 1  ;;  %v5206_v41 = vrot.slane %v5205_v5, 1  ;;  %v5210_v26 = vld [vmem:[#allocation68_spill] sm:$0xff]  ;;  %v5211_v42 = vld [vmem:[#allocation93_spill] sm:$0xff] }
 0x2eb   : > { %v1713_v50 = vsel %vm1125_vm4, %v1710_v58, %v5202_v54  ;;  %v1190_v52 = vadd.f32 %v1148_v16, %v1065_v63  ;;  %v1351_v2 = vadd.f32 %v5209_v56, %v5208_v36  ;;  %v1430_v43 = vrot.slane %v5210_v26, 2  ;;  %v5212_v37 = vld [vmem:[#allocation100_spill] sm:$0xff]  ;;  %v5213_v23 = vld [vmem:[#allocation77_spill] sm:$0xff]  ;;  %v5215_v54 = vld [vmem:[#allocation82_spill] sm:$0xff] }
 0x2ec   : > { %v1757_v57 = vadd.f32 %v1713_v50, %v1633_v38  ;;  %v1308_v55 = vsel %vm1000_vm3, %v5206_v41, %v5204_v28  ;;  %v1494_v58 = vmul.f32 %v3606_v18, %v5211_v42  ;;  %v1846_v63 = vpack.c.bf16 %v1833_v60, %v1832_v0  ;;  %v5216_v26 = vld [vmem:[#allocation65_spill] sm:$0xff] }
 0x2ed   : > { %v1226_v11 = vadd.f32 %v5207_v24, %v1190_v52  ;;  %v1756_v20 = vadd.f32 %v1711_v40, %v1632_v34  ;;  %v1495_v38 = vmul.f32 %v3606_v18, %v5212_v37  ;;  %v5214_v16 = vrot.slane %v5213_v23, 2  ;;  %v2599_v34 = vld [vmem:[#allocation10 + $0x8] ss:$0 sm:$0xff] }
 0x2ee   : > { %v1780_v39 = vmul.f32 %v4486_v8, %v1757_v57  ;;  %v1475_v50 = vadd.f32 %v5215_v54, %v1351_v2  ;;  %v1534_v52 = vmul.f32 %v3598_v6, %v5211_v42  ;;  %2385 = vmatprep.mubr.msk.bf16.mxu1 %vm1868_vm5, %v1846_v63  ;;  %v1535_v0 = vmul.f32 %v3598_v6, %v5212_v37  ;;  %v5220_v23 = vld [vmem:[#allocation64_spill] sm:$0xff] }
 0x2ef   : > { %v1350_v25 = vadd.f32 %v1308_v55, %v1226_v11  ;;  %v1432_v51 = vsel %vm1125_vm4, %v1430_v43, %v5214_v16  ;;  %v1779_v60 = vmul.f32 %v4486_v8, %v1756_v20  ;;  %v1658_v57 = vmul.f32 %v2599_v34, %v5211_v42  ;;  %v5217_v43 = vld [vmem:[#allocation78_spill] sm:$0xff]  ;;  %v5218_v20 = vld [vmem:[#allocation75_spill] sm:$0xff] }
 0x2f0   : > { %v1803_v40 = vadd.f32 %v4499_v27, %v1780_v39  ;;  %v1511_v28 = vadd.f32 %v1495_v38, %v1475_v50  ;;  %v1590_v5 = vrot.slane %v1534_v52, 1  ;;  %v1659_v41 = vmul.f32 %v2599_v34, %v5212_v37 }
 0x2f1   : > { %v1474_v29 = vadd.f32 %v1432_v51, %v1350_v25  ;;  %v1802_v55 = vadd.f32 %v4499_v27, %v1779_v60  ;;  %v1591_v11 = vrot.slane %v1535_v0, 1  ;;  %v1714_v36 = vrot.slane %v1658_v57, 2  ;;  %v5222_v0 = vld [vmem:[#allocation95_spill] sm:$0xff] }
 0x2f2   : > { %v1819_v24 = vmax.f32 %v1803_v40, 0.0  ;;  %v1715_v2 = vrot.slane %v1659_v41, 2  ;;  %v1067_v63 = vadd.f32 %v5217_v43, %v5216_v26  ;;  %v5219_v39 = vrot.slane %v5218_v20, 2 }
 0x2f3   : > { %v1510_v56 = vadd.f32 %v1494_v58, %v1474_v29  ;;  %v5221_v16 = vrot.slane %v5220_v23, 2  ;;  %v1818_v38 = vmax.f32 %v1802_v55, 0.0  ;;  %v1592_v37 = vsel %vm1000_vm3, %v1590_v5, %v1591_v11  ;;  %v5224_v5 = vld [vmem:[#allocation96_spill] sm:$0xff] }
 0x2f4   : > { %v1835_v25 = vmin.f32 %v1819_v24, 6.0  ;;  %v1594_v51 = vsel %vm1000_vm3, %v1591_v11, %v1593_v13  ;;  %v1716_v50 = vsel %vm1125_vm4, %v1714_v36, %v1715_v2  ;;  %v1718_v52 = vsel %vm1125_vm4, %v1715_v2, %v1717_v45  ;;  %v5225_v45 = vld [vmem:[#allocation94_spill] sm:$0xff]  ;;  %v5227_v36 = vld [vmem:[#allocation97_spill] sm:$0xff] }
 0x2f5   : > { %v1153_v42 = vsel %vm1125_vm4, %v5221_v16, %v5219_v39  ;;  %v1634_v54 = vadd.f32 %v1592_v37, %v1510_v56  ;;  %v1635_v58 = vadd.f32 %v1594_v51, %v1511_v28  ;;  %v1834_v60 = vmin.f32 %v1818_v38, 6.0 }
 0x2f6   : > { %v1192_v40 = vadd.f32 %v1153_v42, %v1067_v63  ;;  %v5223_v57 = vrot.slane %v5222_v0, 1  ;;  %v1435_v32 = vrot.slane %v5224_v5, 2  ;;  %v1477_v28 = vadd.f32 %v4295_v59, %v4288_v4  ;;  %v5232_v0 = vld [vmem:[#allocation99_spill] sm:$0xff] }
 0x2f7   : > { %v1758_v41 = vadd.f32 %v1716_v50, %v1634_v54  ;;  %v1759_v13 = vadd.f32 %v1718_v52, %v1635_v58  ;;  %v1496_v47 = vmul.f32 %v3606_v18, %v4128_v62  ;;  %v1847_v55 = vpack.c.bf16 %v1835_v25, %v1834_v60 }
 0x2f8   : > { %v1313_v29 = vsel %vm1000_vm3, %v5223_v57, %v1312_v44  ;;  %v1228_v24 = vadd.f32 %v5225_v45, %v1192_v40  ;;  %v5226_v11 = vrot.slane %v4271_v53, 2  ;;  %v1497_v44 = vmul.f32 %v3606_v18, %v5227_v36 }
 0x2f9   : > { %v1781_v56 = vmul.f32 %v4486_v8, %v1758_v41  ;;  %v1782_v2 = vmul.f32 %v4486_v8, %v1759_v13  ;;  %v1537_v4 = vmul.f32 %v3598_v6, %v4128_v62  ;;  %v1538_v59 = vmul.f32 %v3598_v6, %v5227_v36  ;;  %2386 = vmatmul.mubr.msk.bf16.gmra.mrb[4].mxu1 %vm1868_vm5, %v1847_v55 }
 0x2fa   : > { %v1437_v31 = vsel %vm1125_vm4, %v1435_v32, %v5226_v11  ;;  %v1352_v26 = vadd.f32 %v1313_v29, %v1228_v24  ;;  %v1513_v43 = vadd.f32 %v1497_v44, %v1477_v28  ;;  %v1661_v53 = vmul.f32 %v2599_v34, %v4128_v62 }
 0x2fb   : > { %v1662_v63 = vmul.f32 %v2599_v34, %v5227_v36  ;;  %v1804_v18 = vadd.f32 %v4499_v27, %v1781_v56  ;;  %v1805_v20 = vadd.f32 %v4499_v27, %v1782_v2  ;;  %v1595_v39 = vrot.slane %v1537_v4, 1  ;;  %v5230_v34 = vld [vmem:[#allocation98_spill] sm:$0xff] }
 0x2fc   : > { %v1596_v23 = vrot.slane %v1538_v59, 1  ;;  %v1476_v16 = vadd.f32 %v1437_v31, %v1352_v26  ;;  %v1719_v42 = vrot.slane %v1661_v53, 2  ;;  %v5228_v25 = vrot.slane %v4445_v10, 1 }
 0x2fd   : > { %v1720_v38 = vrot.slane %v1662_v63, 2  ;;  %v5229_v6 = vrot.slane %v4360_v48, 1  ;;  %v1820_v51 = vmax.f32 %v1804_v18, 0.0  ;;  %v1821_v54 = vmax.f32 %v1805_v20, 0.0 }
 0x2fe   : > { %v1597_v62 = vsel %vm1000_vm3, %v1595_v39, %v1596_v23  ;;  %v5231_v58 = vrot.slane %v5230_v34, 1  ;;  %v1512_v52 = vadd.f32 %v1496_v47, %v1476_v16  ;;  %v5233_v57 = vrot.slane %v5232_v0, 2 }
 0x2ff   : > { %v1602_v37 = vsel %vm1000_vm3, %v5229_v6, %v5228_v25  ;;  %v1721_v40 = vsel %vm1125_vm4, %v1719_v42, %v1720_v38  ;;  %v1836_v29 = vmin.f32 %v1820_v51, 6.0  ;;  %v1837_v48 = vmin.f32 %v1821_v54, 6.0 }
 0x300   : > { %v1599_v50 = vsel %vm1000_vm3, %v1596_v23, %v5231_v58  ;;  %v1723_v10 = vsel %vm1125_vm4, %v1720_v38, %v5233_v57  ;;  %v1638_v5 = vadd.f32 %v1602_v37, %v4381_v15  ;;  %v5234_v32 = vrot.slane %v4457_v17, 2 }
 0x301   : > { %v1637_v60 = vadd.f32 %v1599_v50, %v1513_v43  ;;  %v5235_v41 = vrot.slane %v4371_v49, 2  ;;  %v1636_v28 = vadd.f32 %v1597_v62, %v1512_v52  ;;  %v1763_v47 = vadd.f32 %v4481_v21, %v4476_v9  ;;  %v4751_v50 = vld [vmem:[#allocation16] ss:$0 sm:$0xff]  ;;  %v4753_v52 = vld [vmem:[#allocation17] ss:$0 sm:$0xff] }
 0x302   : > { %v1356_v45 = vadd.f32 %v4436_v1, %v4354_v7  ;;  %v1848_v24 = vpack.c.bf16 %v1837_v48, %v1836_v29  ;;  %v5236_v31 = vrot.slane %v4415_v22, 2  ;;  %v5237_v15 = vrot.slane %v4351_v19, 2 }
 0x303   : > { %v1726_v13 = vsel %vm1125_vm4, %v5235_v41, %v5234_v32  ;;  %v1761_v55 = vadd.f32 %v1723_v10, %v1637_v60  ;;  %v5238_v49 = vrot.slane %v4425_v61, 1  ;;  %v5239_v36 = vrot.slane %v4331_v3, 1  ;;  %v2600_v32 = vld [vmem:[%s3525_s3 + $0x10] sm:$0xff] }
 0x304   : > { %v1762_v11 = vadd.f32 %v1726_v13, %v1638_v5  ;;  %v1447_v17 = vsel %vm1125_vm4, %v5237_v15, %v5236_v31  ;;  %v1760_v56 = vadd.f32 %v1721_v40, %v1636_v28  ;;  %v1786_v21 = vmul.f32 %v4486_v8, %v1763_v47  ;;  %2389 = vmatprep.mubr.msk.bf16.mxu1 %vm1868_vm5, %v1848_v24  ;;  %v2601_v28 = vld [vmem:[%s3525_s3] sm:$0xff] }
 0x305   : > { %v1607_v44 = vsel %vm1000_vm3, %v5239_v36, %v5238_v49  ;;  %v1784_v9 = vmul.f32 %v4486_v8, %v1761_v55  ;;  %v1480_v7 = vadd.f32 %v1447_v17, %v1356_v45  ;;  %v1641_v19 = vadd.f32 %v4442_v12, %v4466_v33  ;;  %v2602_v45 = vld [vmem:[%s3525_s3 + $0x18] sm:$0xff] }
 0x306   : > { %v1785_v22 = vmul.f32 %v4486_v8, %v1762_v11  ;;  %v5240_v1 = vrot.slane %v4429_v30, 2  ;;  %v5241_v61 = vrot.slane %v4334_v14, 2  ;;  %v1783_v2 = vmul.f32 %v4486_v8, %v1760_v56  ;;  %v2603_v11 = vld [vmem:[%s3525_s3 + $0x8] sm:$0xff] }
 0x307   : > { %v1807_v4 = vadd.f32 %v4499_v27, %v1784_v9  ;;  %v1809_v59 = vadd.f32 %v4499_v27, %v1786_v21  ;;  %v1516_v26 = vadd.f32 %v4344_v46, %v1480_v7  ;;  %v1765_v53 = vadd.f32 %v4450_v35, %v1641_v19  ;;  %v2604_v19 = vld [vmem:[%s3525_s3 + $0x30] sm:$0xff] }
 0x308   : > { %v1731_v3 = vsel %vm1125_vm4, %v5241_v61, %v5240_v1  ;;  %v1808_v43 = vadd.f32 %v4499_v27, %v1785_v22  ;;  %v1806_v12 = vadd.f32 %v4499_v27, %v1783_v2 }
 0x309   : > { %v1823_v33 = vmax.f32 %v1807_v4, 0.0  ;;  %v1825_v30 = vmax.f32 %v1809_v59, 0.0  ;;  %v1640_v63 = vadd.f32 %v1607_v44, %v1516_v26  ;;  %v1788_v18 = vmul.f32 %v4486_v8, %v1765_v53  ;;  %v2606_v59 = vld [vmem:[%s3525_s3 + $0x38] sm:$0xff] }
 0x30a   : > { %v1824_v14 = vmax.f32 %v1808_v43, 0.0  ;;  %v1822_v20 = vmax.f32 %v1806_v12, 0.0  ;;  %v2607_v43 = vld [vmem:[%s3525_s3 + $0x28] sm:$0xff] }
 0x30b   : > { %v1839_v39 = vmin.f32 %v1823_v33, 6.0  ;;  %v1841_v23 = vmin.f32 %v1825_v30, 6.0  ;;  %v1764_v16 = vadd.f32 %v1731_v3, %v1640_v63  ;;  %v1811_v46 = vadd.f32 %v4499_v27, %v1788_v18  ;;  %v2605_v3 = vld [vmem:[%s3525_s3 + $0x20] sm:$0xff] }
 0x30c   : > { %v1840_v42 = vmin.f32 %v1824_v14, 6.0  ;;  %v1838_v38 = vmin.f32 %v1822_v20, 6.0 }
 0x30d   : > { %v1787_v25 = vmul.f32 %v4486_v8, %v1764_v16  ;;  %v1827_v6 = vmax.f32 %v1811_v46, 0.0 }
 0x30e   : > { %v1850_v35 = vpack.c.bf16 %v1841_v23, %v1840_v42  ;;  %v1849_v37 = vpack.c.bf16 %v1839_v39, %v1838_v38  ;;  %v2608_v42 = vld [vmem:[%s3525_s3 + $0x50] sm:$0xff] }
 0x30f   : > { %v1810_v51 = vadd.f32 %v4499_v27, %v1787_v25  ;;  %v1843_v62 = vmin.f32 %v1827_v6, 6.0  ;;  %v2609_v25 = vld [vmem:[%s3525_s3 + $0x40] sm:$0xff] }
 0x310   : > { %2390 = vmatmul.mubr.msk.bf16.gmra.mrb[8].mxu1 %vm1868_vm5, %v1849_v37  ;;  %v2610_v37 = vld [vmem:[%s3525_s3 + $0x58] sm:$0xff] }
 0x311   : > { %v1826_v54 = vmax.f32 %v1810_v51, 0.0  ;;  %2393 = vmatprep.mubr.msk.bf16.mxu1 %vm1868_vm5, %v1850_v35 }
 0x313   : > { %v1842_v34 = vmin.f32 %v1826_v54, 6.0  ;;  %v2611_v54 = vld [vmem:[%s3525_s3 + $0x48] sm:$0xff] }
 0x315   : > { %v1851_v58 = vpack.c.bf16 %v1843_v62, %v1842_v34 }
 0x318   : > { %2394 = vmatmul.mubr.msk.bf16.gmra.mrb[12].mxu1 %vm1868_vm5, %v1851_v58 }
 0x3b5   : > { %v2383_v8 = vpop.f32.mrb[0].mxu1 }
 0x3b6   : > { %v1999_v27 = vmul.f32 %v2383_v8, %v4751_v50  ;;  %v1927_v60 = vpop.f32.mrb[1].mxu1 }
 0x3b7   : > { %v1997_v40 = vmul.f32 %v4751_v50, %v1927_v60  ;;  %v2384_v0 = vpop.f32.mrb[2].mxu1 }
 0x3b8   : > { %v2022_v57 = vadd.f32 %v4753_v52, %v1999_v27  ;;  %v2000_v10 = vmul.f32 %v2384_v0, %v4751_v50  ;;  %v1930_v29 = vpop.f32.mrb[3].mxu1 }
 0x3b9   : > { %v2020_v48 = vadd.f32 %v4753_v52, %v1997_v40  ;;  %v1998_v5 = vmul.f32 %v4751_v50, %v1930_v29 }
 0x3ba   : > { %v2038_v41 = vadd.f32 %v2600_v32, %v2022_v57  ;;  %v2023_v13 = vadd.f32 %v4753_v52, %v2000_v10 }
 0x3bb   : > { %v2036_v55 = vadd.f32 %v2601_v28, %v2020_v48  ;;  %v2021_v47 = vadd.f32 %v4753_v52, %v1998_v5  ;;  %v2612_v48 = vld [vmem:[%s3525_s3 + $0x70] sm:$0xff] }
 0x3bc   : > { %2054 = vst.msk [vmem:[%s4767_s28 + $0x10] sm:$0xff] %vm561_vm1, %v2038_v41  ;;  %v2039_v24 = vadd.f32 %v2602_v45, %v2023_v13  ;;  %v2613_v41 = vld [vmem:[%s3525_s3 + $0x60] sm:$0xff] }
 0x3bd   : > { %2052 = vst.msk [vmem:[%s4767_s28] sm:$0xff] %vm561_vm1, %v2036_v55  ;;  %v2037_v31 = vadd.f32 %v2603_v11, %v2021_v47  ;;  %v2614_v55 = vld [vmem:[%s3525_s3 + $0x78] sm:$0xff] }
 0x3be   : > { %2055 = vst.msk [vmem:[%s4767_s28 + $0x18] sm:$0xff] %vm561_vm1, %v2039_v24 }
 0x3bf   : > { %2053 = vst.msk [vmem:[%s4767_s28 + $0x8] sm:$0xff] %vm561_vm1, %v2037_v31 }
 0x3cc   : > { %v2387_v15 = vpop.f32.mrb[4].mxu1 }
 0x3cd   : > { %v2003_v17 = vmul.f32 %v2387_v15, %v4751_v50  ;;  %v1943_v49 = vpop.f32.mrb[5].mxu1 }
 0x3ce   : > { %v2001_v36 = vmul.f32 %v4751_v50, %v1943_v49  ;;  %v2388_v44 = vpop.f32.mrb[6].mxu1 }
 0x3cf   : > { %v2026_v56 = vadd.f32 %v4753_v52, %v2003_v17  ;;  %v2004_v9 = vmul.f32 %v2388_v44, %v4751_v50  ;;  %v1946_v21 = vpop.f32.mrb[7].mxu1 }
 0x3d0   : > { %v2024_v7 = vadd.f32 %v4753_v52, %v2001_v36  ;;  %v2002_v22 = vmul.f32 %v4751_v50, %v1946_v21 }
 0x3d1   : > { %v2042_v1 = vadd.f32 %v2604_v19, %v2026_v56  ;;  %v2027_v61 = vadd.f32 %v4753_v52, %v2004_v9 }
 0x3d2   : > { %v2040_v2 = vadd.f32 %v2605_v3, %v2024_v7  ;;  %v2025_v4 = vadd.f32 %v4753_v52, %v2002_v22 }
 0x3d3   : > { %2058 = vst.msk [vmem:[%s4767_s28 + $0x30] sm:$0xff] %vm561_vm1, %v2042_v1  ;;  %v2043_v26 = vadd.f32 %v2606_v59, %v2027_v61 }
 0x3d4   : > { %2056 = vst.msk [vmem:[%s4767_s28 + $0x20] sm:$0xff] %vm561_vm1, %v2040_v2  ;;  %v2041_v53 = vadd.f32 %v2607_v43, %v2025_v4 }
 0x3d5   : > { %2059 = vst.msk [vmem:[%s4767_s28 + $0x38] sm:$0xff] %vm561_vm1, %v2043_v26 }
 0x3d6   : > { %2057 = vst.msk [vmem:[%s4767_s28 + $0x28] sm:$0xff] %vm561_vm1, %v2041_v53 }
 0x3e3   : > { %v2391_v12 = vpop.f32.mrb[8].mxu1 }
 0x3e4   : > { %v2007_v33 = vmul.f32 %v2391_v12, %v4751_v50  ;;  %v1959_v30 = vpop.f32.mrb[9].mxu1 }
 0x3e5   : > { %v2005_v63 = vmul.f32 %v4751_v50, %v1959_v30  ;;  %v2392_v14 = vpop.f32.mrb[10].mxu1 }
 0x3e6   : > { %v2030_v18 = vadd.f32 %v4753_v52, %v2007_v33  ;;  %v2008_v20 = vmul.f32 %v2392_v14, %v4751_v50  ;;  %v1962_v39 = vpop.f32.mrb[11].mxu1 }
 0x3e7   : > { %v2028_v23 = vadd.f32 %v4753_v52, %v2005_v63  ;;  %v2006_v16 = vmul.f32 %v4751_v50, %v1962_v39 }
 0x3e8   : > { %v2046_v46 = vadd.f32 %v2608_v42, %v2030_v18  ;;  %v2031_v38 = vadd.f32 %v4753_v52, %v2008_v20 }
 0x3e9   : > { %v2044_v35 = vadd.f32 %v2609_v25, %v2028_v23  ;;  %v2029_v6 = vadd.f32 %v4753_v52, %v2006_v16 }
 0x3ea   : > { %2062 = vst.msk [vmem:[%s4767_s28 + $0x50] sm:$0xff] %vm561_vm1, %v2046_v46  ;;  %v2047_v51 = vadd.f32 %v2610_v37, %v2031_v38 }
 0x3eb   : > { %2060 = vst.msk [vmem:[%s4767_s28 + $0x40] sm:$0xff] %vm561_vm1, %v2044_v35  ;;  %v2045_v62 = vadd.f32 %v2611_v54, %v2029_v6  ;;  %v2395_v34 = vpop.f32.mrb[12].mxu1 }
 0x3ec   : > { %2063 = vst.msk [vmem:[%s4767_s28 + $0x58] sm:$0xff] %vm561_vm1, %v2047_v51  ;;  %v2011_v58 = vmul.f32 %v2395_v34, %v4751_v50  ;;  %v1975_v8 = vpop.f32.mrb[13].mxu1 }
 0x3ed   : > { %2061 = vst.msk [vmem:[%s4767_s28 + $0x48] sm:$0xff] %vm561_vm1, %v2045_v62  ;;  %v2009_v27 = vmul.f32 %v4751_v50, %v1975_v8  ;;  %v2396_v60 = vpop.f32.mrb[14].mxu1 }
 0x3ee   : > { %v2034_v40 = vadd.f32 %v4753_v52, %v2011_v58  ;;  %v2012_v0 = vmul.f32 %v2396_v60, %v4751_v50  ;;  %v1978_v57 = vpop.f32.mrb[15].mxu1 }
 0x3ef   : > { %v2032_v10 = vadd.f32 %v4753_v52, %v2009_v27  ;;  %v2010_v29 = vmul.f32 %v4751_v50, %v1978_v57  ;;  %v2615_v50 = vld [vmem:[%s3525_s3 + $0x68] sm:$0xff] }
 0x3f0   : > { %v2050_v5 = vadd.f32 %v2612_v48, %v2034_v40  ;;  %v2035_v32 = vadd.f32 %v4753_v52, %v2012_v0 }
 0x3f1   : > { %v2048_v13 = vadd.f32 %v2613_v41, %v2032_v10  ;;  %v2033_v28 = vadd.f32 %v4753_v52, %v2010_v29 }
 0x3f2   : > { %2066 = vst.msk [vmem:[%s4767_s28 + $0x70] sm:$0xff] %vm561_vm1, %v2050_v5  ;;  %v2051_v47 = vadd.f32 %v2614_v55, %v2035_v32 }
 0x3f3   : > { %2064 = vst.msk [vmem:[%s4767_s28 + $0x60] sm:$0xff] %vm561_vm1, %v2048_v13  ;;  %v2049_v45 = vadd.f32 %v2615_v50, %v2033_v28 }
 0x3f4   : > { %2067 = vst.msk [vmem:[%s4767_s28 + $0x78] sm:$0xff] %vm561_vm1, %v2051_v47 }
 0x3f5   : > { %2065 = vst.msk [vmem:[%s4767_s28 + $0x68] sm:$0xff] %vm561_vm1, %v2049_v45 }
 0x3f6   : > { %2911 = shalt.err (!%p2908_p0)
}
 0x3f7   : > { %s2912_s3 = scalar_lea.hbm %s4838_s25, 2048  ;;  %s2916_s28 = scalar_lea.hbm %s5245_s26, 8192 }
 0x3f8   : > { %p2913_p3 = scmp.ne.s32.totalorder %s4838_s25, %s2912_s3  ;;  %p2917_p8 = scmp.lt.u32.totalorder %s4838_s25, %s5245_s26 }
 0x3f9   : > { %p2918_p5 = scmp.lt.u32.totalorder %s2916_s28, %s2912_s3  ;;  %p2920_p2 = scmp.lt.u32.totalorder %s2912_s3, %s4838_s25 }
 0x3fa   : > { %p2914_p4 = pnand %p2913_p3, %p5246_p7 }
 0x3fb   : > { %p2919_p12 = por %p2918_p5, %p2917_p8 }
 0x3fc   : > { %p2915_p10 = pneg %p2914_p4 }
 0x3fd   : > { %p2921_p6 = por %p2920_p2, %p2919_p12 }
 0x3ff   : > { %p2922_p1 = pnand %p2921_p6, %p2915_p10 }
 0x401   : > { %2925 = shalt.err (!%p2922_p1)
}
 0x402   : > { %s3057_s20 = smov 128   ;;  %s3058_s6 = smov 8  }
 0x403   : > { %2436 = dma.vmem_to_hbm [thread:$0]  (%p5246_p7), %s4840_s24, 2048, %s4838_s25, %s4851_s5, %s3057_s20, %s3057_s20, %s3058_s6  }
 0x404 PF: > { %s5247_s19 = sld [smem:[#allocation27_spill]]  ;;  %p2493_p11 = scmp.ge.s32.totalorder %s3040_s23, 2 }
 0x405   : > { %p5248_p9 = scmp.ne.s32.totalorder %s5037_s10, 0 }
 0x407   : > { %p2471_p13 = pnand %p2493_p11, %p5248_p9 }
 0x40a   : > { %s2100_s2 = sand.u32 1, %s5247_s19  }
 0x40b   : > { %s2101_s4 = scalar_lea.sflag [#allocation4], %s2100_s2 }
 0x40c   : > { %2995 = dma.done.wait (!%p2471_p13), %s2101_s4, 2048  }
 0x40d   : > { %2997 = vsyncadd (!%p2471_p13), %s2101_s4, 4294965248  ;;  %s31_s23 = sadd.s32 1, %s3040_s23   ;;  %s5249_s3 = sld [smem:[#allocation28_spill]] }
 0x40e   : > { %p28_p0 = scmp.ge.s32.totalorder %s31_s23, 6   ;;  %s5250_s30 = smov %s3432_s13 }
 0x40f   : > { %s5252_s14 = smov %s3008_s15  ;;  %s5253_s15 = smov %s3435_s0 }
 0x410   : > { %s5254_s16 = smov %s3016_s17  ;;  %s5255_s17 = smov %s3020_s18 }
 0x411   : > { %s5256_s18 = smov %s5250_s30  ;;  %s5257_s19 = smov %s3032_s21 }
 0x412   : > { %s5258_s20 = smov %s3036_s22  ;;  %s5259_s21 = smov %s5262_s11 }
 0x413   : > { %s5251_s13 = smov %s5249_s3  ;;  %s5260_s22 = smov %s5266_s12 }
 0x414   :  { %30 = sbr.rel (!%p28_p0) target bundleno = 23 (0x17), region = 144 }
 0x41b   :  { %2106 = vsyncpa [#allocation3], 1 }
 0x41c   :  { %2108 = vsyncpa [#allocation3 + $0x1], 1 }
 0x41d   :  { %2109 = vsyncpa [#allocation6], 1 }
 0x41e   :  { %2110 = vsyncpa [#allocation9], 1 }
 0x41f   :  { %2111 = vsyncpa [#allocation12], 1 }
 0x420   :  { %2112 = vsyncpa [#allocation15], 1 }
 0x421   :  { %2113 = vsyncpa [#allocation18], 1 }
 0x422   :  { %2114 = vsyncpa [#allocation4], 1 }
 0x423   :  { %2116 = vsyncpa [#allocation4 + $0x1], 1 }

</bundles_post_ra>
